<compile_context>
chip_gen: v6e
topology: v6e:2x2x1
jax: 0.10.0
libtpu: 0.0.40
codegen_flags: <defaults>
</compile_context>

<pallas_src>
import numpy as np
import jax
import jax.numpy as jnp
from jax.experimental import pallas as pl
from jax.experimental.pallas import tpu as pltpu

CONV_K, CONV_S, CONV_P = 15, 2, 7
POOL_K, POOL_S, POOL_P = 3, 2, 1
BN_EPS = 1e-5
LANE = 128          # vreg lane width
WB = 512            # lane width of the packed "wide" constant slab


def _out_len(L, k, s, p):
    return (L + 2 * p - k) // s + 1


def _conv_toeplitz_pm(w, L):
    """Position-major Toeplitz T: rows (L, Cin), cols (Lout, Cout), channel
    minor.  flat_pm(x) @ T == flat_pm(Conv1d(x, w, stride=2, pad=7, no bias))."""
    Cout, Cin, K = w.shape
    Lout = _out_len(L, CONV_K, CONV_S, CONV_P)
    T = np.zeros((L, Cin, Lout, Cout), np.float32)
    for t in range(Lout):
        for k in range(K):
            p = t * CONV_S + k - CONV_P
            if 0 <= p < L:
                T[p, :, t, :] += w[:, :, k].T
    return T.reshape(L * Cin, Lout * Cout), Lout


def _pool_taps_pm(C, L):
    """POOL_K 0/1 selection matrices (L*C, Lout*C), position-major."""
    Lout = _out_len(L, POOL_K, POOL_S, POOL_P)
    P = np.zeros((POOL_K, L, C, Lout, C), np.float32)
    for k in range(POOL_K):
        for t in range(Lout):
            p = t * POOL_S + k - POOL_P
            if 0 <= p < L:
                for c in range(C):
                    P[k, p, c, t, c] = 1.0
    return P.reshape(POOL_K, L * C, Lout * C), Lout


def _indicator_pm(C, L):
    """0/1 matrix (L*C, C): column c sums the positions of channel c."""
    M = np.zeros((L, C, C), np.float32)
    for c in range(C):
        M[:, c, c] = 1.0
    return M.reshape(L * C, C)


def _split_bands(T, Lin, Cin, Lout, Cout, n_bands):
    """Split a position-major conv Toeplitz into row/col bands whose row ranges
    are 128-aligned (so the matching input lane slices are aligned vreg loads).
    Returns [(row_lo, row_hi, n_cols, band_matrix), ...]."""
    assert Lout % n_bands == 0
    tg = Lout // n_bands
    bands = []
    for g in range(n_bands):
        t0, t1 = g * tg, (g + 1) * tg
        p_lo = max(0, t0 * CONV_S - CONV_P)
        p_hi = min(Lin - 1, (t1 - 1) * CONV_S + (CONV_K - 1) - CONV_P)
        r_lo = (p_lo * Cin) // LANE * LANE
        r_hi = min(Lin * Cin, (-(-((p_hi + 1) * Cin) // LANE)) * LANE)
        c_lo, c_hi = t0 * Cout, t1 * Cout
        # safety: rows outside [r_lo, r_hi) contribute nothing to these columns
        assert not T[:r_lo, c_lo:c_hi].any()
        assert not T[r_hi:, c_lo:c_hi].any()
        bands.append((r_lo, r_hi, c_hi - c_lo,
                      np.ascontiguousarray(T[r_lo:r_hi, c_lo:c_hi])))
    return bands


def _pool_block(C, Lc):
    """(Lc*C, WB) slab chunk: maxpool tap k at lane offset 128*k (so per-tap
    slices are vreg-aligned), channel-sum 0/1 indicator M at lane offset 384.
    The alignment padding lives inside the slab's tile padding -> free."""
    taps, Lp = _pool_taps_pm(C, Lc)
    assert Lp * C <= LANE and C <= WB - POOL_K * LANE
    blk = np.zeros((Lc * C, WB), np.float32)
    for k in range(POOL_K):
        blk[:, LANE * k:LANE * k + Lp * C] = taps[k]
    blk[:, POOL_K * LANE:POOL_K * LANE + C] = _indicator_pm(C, Lc)
    return blk, Lp


def _f32_as_bf16_pair(v):
    """Split an f32 vector into (hi, lo) with both bf16-representable and
    hi + lo ~= v to ~2^-16 relative, so exact-ish params can live in a bf16
    slab (removes the separate f32 input)."""
    hi = np.asarray(jnp.asarray(v, jnp.bfloat16).astype(jnp.float32))
    return hi, v - hi


def _build_constants(params, B, Cin, L):
    (w1, g1, be1, w2, g2, be2, w3, g3, be3, wfc, bfc) = [
        np.asarray(p, np.float32) for p in params]
    num_classes = wfc.shape[0]

    # ---------- per-block structured matrices (all position-major) ----------
    C1, C2, C3 = w1.shape[0], w2.shape[0], w3.shape[0]
    T1, Lc1 = _conv_toeplitz_pm(w1, L)        # (L*Cin, Lc1*C1)
    pm1, Lp1 = _pool_block(C1, Lc1)
    T2, Lc2 = _conv_toeplitz_pm(w2, Lp1)      # (Lp1*C1, Lc2*C2)
    pm2, Lp2 = _pool_block(C2, Lc2)
    T3, Lc3 = _conv_toeplitz_pm(w3, Lp2)      # (Lp2*C2, Lc3*C3)
    pm3, Lp3 = _pool_block(C3, Lc3)

    # Block-1 Toeplitz dominates the constant bytes: split into lane-aligned
    # bands (2 bands of (<=1408, 128) for the default config).
    n_bands = 2 if (Lc1 % 2 == 0 and (Lc1 // 2) * C1 % LANE == 0) else 1
    bands = _split_bands(T1, L, Cin, Lc1, C1, n_bands)

    # ---------- slab A: conv Toeplitz matrices (bf16, lane width 128) --------
    a_mats = [b[3] for b in bands] + [T2, T3]
    WA = max(-(-m.shape[1] // LANE) * LANE for m in a_mats)
    a_rows, a_parts, off = [], [], 0
    for m in a_mats:
        pad = np.zeros((m.shape[0], WA), np.float32)
        pad[:, :m.shape[1]] = m
        a_rows.append(off)
        a_parts.append(pad)
        off += m.shape[0]
    slab_a = np.concatenate(a_parts, axis=0)

    # ---------- slab B: pool/indicator/broadcast/classifier + params --------
    Mt1 = _indicator_pm(C1, Lc1).T            # exact 0/1 broadcast matrices
    Mt2 = _indicator_pm(C2, Lc2).T
    Mt3 = _indicator_pm(C3, Lc3).T
    # AdaptiveAvgPool1d(1) + Linear composed into one (Lp3*C3, classes) matrix.
    AW = (_indicator_pm(C3, Lp3) / Lp3) @ wfc.T
    # BN affine params + fc bias as bf16 hi/lo row pairs (exact to ~2^-16).
    par = np.zeros((16, WB), np.float32)
    par_rows, r = [], 0
    for g, be, C in ((g1, be1, C1), (g2, be2, C2), (g3, be3, C3)):
        par_rows.append(r)
        par[r, :C], par[r + 1, :C] = _f32_as_bf16_pair(g)
        par[r + 2, :C], par[r + 3, :C] = _f32_as_bf16_pair(be)
        r += 4
    bias_row = r
    par[r, :num_classes], par[r + 1, :num_classes] = _f32_as_bf16_pair(bfc)

    b_mats = [("pm1", pm1, pm1.shape[0]), ("pm2", pm2, pm2.shape[0]),
              ("pm3", pm3, pm3.shape[0]),
              ("mt1", Mt1, 16), ("mt2", Mt2, 16), ("mt3", Mt3, 16),
              ("aw", AW, 32), ("par", par, 16)]
    b_rows, b_parts, off = {}, [], 0
    for name, m, rpad in b_mats:
        pad = np.zeros((rpad, WB), np.float32)
        pad[:m.shape[0], :m.shape[1]] = m
        b_rows[name] = off
        b_parts.append(pad)
        off += rpad
    slab_b = np.concatenate(b_parts, axis=0)

    PR = b_rows["par"]
    blocks = [
        dict(C=C1, Lc=Lc1, CLp=Lp1 * C1, conv=None,
             pm=b_rows["pm1"], mt=b_rows["mt1"], par=PR + par_rows[0]),
        dict(C=C2, Lc=Lc2, CLp=Lp2 * C2,
             conv=(a_rows[n_bands + 0], T2.shape[0], T2.shape[1]),
             pm=b_rows["pm2"], mt=b_rows["mt2"], par=PR + par_rows[1]),
        dict(C=C3, Lc=Lc3, CLp=Lp3 * C3,
             conv=(a_rows[n_bands + 1], T3.shape[0], T3.shape[1]),
             pm=b_rows["pm3"], mt=b_rows["mt3"], par=PR + par_rows[2]),
    ]
    band_cfg = [(b[0], b[1], a_rows[i], b[2]) for i, b in enumerate(bands)]
    cfg = dict(bands=band_cfg, blocks=blocks, aw=b_rows["aw"],
               n_feat=Lp3 * C3, n_cls=num_classes, bias=PR + bias_row)

    # advisory cost estimate (kernel is launch/DMA-latency bound at B=2)
    flops = 2 * B * cfg["n_feat"] * cfg["n_cls"]
    for (r_lo, r_hi, _, ncol) in band_cfg:
        flops += 2 * B * (r_hi - r_lo) * ncol
    for blk in blocks:
        CLc = blk["C"] * blk["Lc"]
        if blk["conv"] is not None:
            flops += 2 * B * blk["conv"][1] * blk["conv"][2]
        flops += 2 * (4 * B) * CLc * blk["C"]          # BN stats matmul
        flops += 2 * 4 * blk["C"] * CLc                # scale/shift broadcast
        flops += 2 * B * CLc * POOL_K * LANE           # maxpool taps
    bytes_accessed = (B * L * Cin * 4 + slab_a.size * 2 + slab_b.size * 2
                      + B * num_classes * 4)
    cost = pl.CostEstimate(flops=int(flops), transcendentals=C1 + C2 + C3,
                           bytes_accessed=int(bytes_accessed))

    return (jnp.asarray(slab_a, jnp.bfloat16),
            jnp.asarray(slab_b, jnp.bfloat16), cfg, cost)


def _make_kernel(B, cfg):
    bf16, f32 = jnp.bfloat16, jnp.float32

    def hilo(v):                       # split an f32 value into bf16 hi/lo
        hi = v.astype(bf16)
        return hi, (v - hi.astype(f32)).astype(bf16)

    def kernel(x_ref, a_ref, b_ref, out_ref):
        # ---- block-1 Conv1d: banded Toeplitz, matmuls on aligned slices ----
        xb = x_ref[...].astype(bf16)                              # (B, L*Cin)
        parts = []
        for (r_lo, r_hi, a_row, ncol) in cfg["bands"]:
            parts.append(jnp.dot(xb[:, r_lo:r_hi],
                                 a_ref[a_row:a_row + (r_hi - r_lo), 0:ncol],
                                 preferred_element_type=f32))
        y = jnp.concatenate(parts, axis=1) if len(parts) > 1 else parts[0]

        for blk in cfg["blocks"]:
            C, Lc, CLp = blk["C"], blk["Lc"], blk["CLp"]
            CLc = C * Lc
            pm, mt, pr = blk["pm"], blk["mt"], blk["par"]
            if blk["conv"] is not None:                           # blocks 2, 3
                a_row, kdim, ncol = blk["conv"]
                y = jnp.dot(y.astype(bf16), a_ref[a_row:a_row + kdim, 0:ncol],
                            preferred_element_type=f32)           # (B, CLc)

            # --- BatchNorm1d (training-mode batch stats, biased variance) ---
            # Per-channel sum(y) and sum(y^2) with ONE matmul against the exact
            # 0/1 indicator; operands hi/lo split so the sums are ~f32-accurate
            # (fixes the bf16 y^2 / cancellation issue from the review).
            ysq = y * y
            yh, yl = hilo(y)
            qh, ql = hilo(ysq)
            stk = jnp.concatenate([yh, yl, qh, ql], axis=0)       # (4B, CLc)
            stats = jnp.dot(stk, b_ref[pm:pm + CLc, 384:384 + C],
                            preferred_element_type=f32)           # (4B, C)
            cnt = float(B * Lc)
            mean = jnp.sum(stats[0:2 * B], axis=0, keepdims=True) / cnt
            msq = jnp.sum(stats[2 * B:4 * B], axis=0, keepdims=True) / cnt
            var = jnp.maximum(msq - mean * mean, 0.0)
            inv = jax.lax.rsqrt(var + BN_EPS)
            gamma = (b_ref[pr:pr + 1, 0:C].astype(f32)
                     + b_ref[pr + 1:pr + 2, 0:C].astype(f32))
            beta = (b_ref[pr + 2:pr + 3, 0:C].astype(f32)
                    + b_ref[pr + 3:pr + 4, 0:C].astype(f32))
            scale = inv * gamma
            shift = beta - mean * scale
            # Broadcast per-channel scale/shift across lanes with one matmul
            # against the 0/1 transpose indicator (hi/lo split for accuracy).
            sh, sl = hilo(scale)
            th, tl = hilo(shift)
            ssb = jnp.dot(jnp.concatenate([sh, sl, th, tl], axis=0),
                          b_ref[mt:mt + C, 0:CLc],
                          preferred_element_type=f32)             # (4, CLc)
            scale_b = ssb[0:1, :] + ssb[1:2, :]
            shift_b = ssb[2:3, :] + ssb[3:4, :]

            # --- BN affine + ReLU (VPU) ---
            y = jnp.maximum(y * scale_b + shift_b, 0.0)

            # --- MaxPool1d(3,2,1): taps packed at lane offsets 0/128/256 ->
            #     ONE matmul + max over 128-aligned slices.  Post-ReLU y >= 0,
            #     so the implicit 0 stands in exactly for the -inf pad tap.
            taps = jnp.dot(y.astype(bf16), b_ref[pm:pm + CLc, 0:3 * LANE],
                           preferred_element_type=f32)            # (B, 384)
            y = jnp.maximum(
                jnp.maximum(taps[:, 0:CLp], taps[:, LANE:LANE + CLp]),
                taps[:, 2 * LANE:2 * LANE + CLp])                 # (B, CLp)

        # ---- AdaptiveAvgPool1d(1) + flatten + Linear (pre-composed) ----
        aw, nf, nc, br = cfg["aw"], cfg["n_feat"], cfg["n_cls"], cfg["bias"]
        bias = (b_ref[br:br + 1, 0:nc].astype(f32)
                + b_ref[br + 1:br + 2, 0:nc].astype(f32))
        out_ref[...] = jnp.dot(y.astype(bf16), b_ref[aw:aw + nf, 0:nc],
                               preferred_element_type=f32) + bias

    return kernel


def conv1dnet_forward(x, params):
    """x: (B, inplanes, L) float32 — PyTorch NCW convention."""
    B, Cin, L = x.shape
    slab_a, slab_b, cfg, cost = _build_constants(params, B, Cin, L)
    # flatten POSITION-major (channel minor) so the conv Toeplitz is banded
    x2d = jnp.transpose(jnp.asarray(x, jnp.float32), (0, 2, 1)).reshape(B, L * Cin)
    kernel = _make_kernel(B, cfg)
    return pl.pallas_call(
        kernel,
        out_shape=jax.ShapeDtypeStruct((B, cfg["n_cls"]), jnp.float32),
        in_specs=[pl.BlockSpec(memory_space=pltpu.MemorySpace.VMEM)] * 3,
        out_specs=pl.BlockSpec(memory_space=pltpu.MemorySpace.VMEM),
        compiler_params=pltpu.CompilerParams(
            vmem_limit_bytes=8 * 1024 * 1024),
        cost_estimate=cost,
    )(x2d, slab_a, slab_b)


def _reference_forward(x, params):
    """Pure-JAX reference matching the PyTorch module (training-mode BN)."""
    w1, g1, be1, w2, g2, be2, w3, g3, be3, wfc, bfc = params

    def block(y, w, g, be):
        y = jax.lax.conv_general_dilated(
            y, w, window_strides=(CONV_S,), padding=[(CONV_P, CONV_P)],
            dimension_numbers=("NCH", "OIH", "NCH"))
        mean = jnp.mean(y, axis=(0, 2), keepdims=True)
        var = jnp.mean(jnp.square(y - mean), axis=(0, 2), keepdims=True)
        y = (y - mean) * jax.lax.rsqrt(var + BN_EPS)
        y = y * g[None, :, None] + be[None, :, None]
        y = jnp.maximum(y, 0.0)
        y = jax.lax.reduce_window(
            y, -jnp.inf, jax.lax.max, (1, 1, POOL_K), (1, 1, POOL_S),
            [(0, 0), (0, 0), (POOL_P, POOL_P)])
        return y

    y = block(jnp.asarray(x, jnp.float32), w1, g1, be1)
    y = block(y, w2, g2, be2)
    y = block(y, w3, g3, be3)
    feat = jnp.mean(y, axis=2)
    return feat @ wfc.T + bfc


if __name__ == "__main__":
    key = jax.random.PRNGKey(0)
    ks = jax.random.split(key, 12)
    B, inplanes, L, num_classes = 2, 19, 128, 12

    # Deterministic synthetic parameters (shapes follow Conv1dNet.__init__).
    w1 = 0.1 * jax.random.normal(ks[0], (4, inplanes, 15), jnp.float32)
    g1 = 1.0 + 0.1 * jax.random.normal(ks[1], (4,), jnp.float32)
    be1 = 0.1 * jax.random.normal(ks[2], (4,), jnp.float32)
    w2 = 0.1 * jax.random.normal(ks[3], (8, 4, 15), jnp.float32)
    g2 = 1.0 + 0.1 * jax.random.normal(ks[4], (8,), jnp.float32)
    be2 = 0.1 * jax.random.normal(ks[5], (8,), jnp.float32)
    w3 = 0.1 * jax.random.normal(ks[6], (16, 8, 15), jnp.float32)
    g3 = 1.0 + 0.1 * jax.random.normal(ks[7], (16,), jnp.float32)
    be3 = 0.1 * jax.random.normal(ks[8], (16,), jnp.float32)
    wfc = 0.1 * jax.random.normal(ks[9], (num_classes, 16), jnp.float32)
    bfc = 0.1 * jax.random.normal(ks[10], (num_classes,), jnp.float32)
    x = jax.random.normal(ks[11], (B, inplanes, L), jnp.float32)
    params = (w1, g1, be1, w2, g2, be2, w3, g3, be3, wfc, bfc)

    out = jax.block_until_ready(conv1dnet_forward(x, params))
    ref = jax.block_until_ready(_reference_forward(x, params))

    assert out.shape == (B, num_classes)
    assert bool(jnp.all(jnp.isfinite(out)))
    err = float(jnp.max(jnp.abs(out - ref)))
    assert err < 5e-2, f"mismatch vs pure-JAX reference: {err}"
    print("KERNEL_OK")
</pallas_src>

<mosaic_0001>
module attributes {stable_mosaic.version = 11 : i64} {
  func.func @kernel(%arg0: memref<2x2432xf32, #tpu.memory_space<vmem>>, %arg1: memref<3008x128xbf16, #tpu.memory_space<vmem>>, %arg2: memref<544x512xbf16, #tpu.memory_space<vmem>>, %arg3: memref<2x12xf32, #tpu.memory_space<vmem>>) attributes {dimension_semantics = [], scalar_prefetch = 0 : i64, scratch_operands = 0 : i64, tpu.core_type = #tpu.core_type<tc>} {
    %c0 = arith.constant 0 : index
    %c0_0 = arith.constant 0 : index
    %0 = vector.load %arg0[%c0, %c0_0] : memref<2x2432xf32, #tpu.memory_space<vmem>>, vector<2x2432xf32>
    %1 = arith.truncf %0 : vector<2x2432xf32> to vector<2x2432xbf16>
    %2 = vector.extract_strided_slice %1 {offsets = [0, 0], sizes = [2, 1408], strides = [1, 1]} : vector<2x2432xbf16> to vector<2x1408xbf16>
    %c0_1 = arith.constant 0 : index
    %c0_2 = arith.constant 0 : index
    %3 = vector.load %arg1[%c0_1, %c0_2] : memref<3008x128xbf16, #tpu.memory_space<vmem>>, vector<1408x128xbf16>
    %cst = arith.constant dense<0.000000e+00> : vector<2x128xf32>
    %4 = tpu.matmul %2, %3, %cst {dimension_numbers = #tpu.dot_dimension_numbers<[1], [0], [0], [1], [0, 0, 1, 1], [], []>} : vector<2x1408xbf16>, vector<1408x128xbf16>, vector<2x128xf32> -> vector<2x128xf32>
    %5 = vector.extract_strided_slice %1 {offsets = [0, 1024], sizes = [2, 1408], strides = [1, 1]} : vector<2x2432xbf16> to vector<2x1408xbf16>
    %c1408 = arith.constant 1408 : index
    %c0_3 = arith.constant 0 : index
    %6 = vector.load %arg1[%c1408, %c0_3] : memref<3008x128xbf16, #tpu.memory_space<vmem>>, vector<1408x128xbf16>
    %cst_4 = arith.constant dense<0.000000e+00> : vector<2x128xf32>
    %7 = tpu.matmul %5, %6, %cst_4 {dimension_numbers = #tpu.dot_dimension_numbers<[1], [0], [0], [1], [0, 0, 1, 1], [], []>} : vector<2x1408xbf16>, vector<1408x128xbf16>, vector<2x128xf32> -> vector<2x128xf32>
    %8 = tpu.concatenate %4, %7 in 1 : vector<2x128xf32>, vector<2x128xf32> -> vector<2x256xf32>
    %9 = arith.mulf %8, %8 : vector<2x256xf32>
    %10 = arith.truncf %8 : vector<2x256xf32> to vector<2x256xbf16>
    %11 = arith.extf %10 : vector<2x256xbf16> to vector<2x256xf32>
    %12 = arith.subf %8, %11 : vector<2x256xf32>
    %13 = arith.truncf %12 : vector<2x256xf32> to vector<2x256xbf16>
    %14 = arith.truncf %9 : vector<2x256xf32> to vector<2x256xbf16>
    %15 = arith.extf %14 : vector<2x256xbf16> to vector<2x256xf32>
    %16 = arith.subf %9, %15 : vector<2x256xf32>
    %17 = arith.truncf %16 : vector<2x256xf32> to vector<2x256xbf16>
    %18 = tpu.concatenate %10, %13, %14, %17 in 0 : vector<2x256xbf16>, vector<2x256xbf16>, vector<2x256xbf16>, vector<2x256xbf16> -> vector<8x256xbf16>
    %c0_5 = arith.constant 0 : index
    %c384 = arith.constant 384 : index
    %19 = vector.load %arg2[%c0_5, %c384] : memref<544x512xbf16, #tpu.memory_space<vmem>>, vector<256x4xbf16>
    %cst_6 = arith.constant dense<0.000000e+00> : vector<8x4xf32>
    %20 = tpu.matmul %18, %19, %cst_6 {dimension_numbers = #tpu.dot_dimension_numbers<[1], [0], [0], [1], [0, 0, 1, 1], [], []>} : vector<8x256xbf16>, vector<256x4xbf16>, vector<8x4xf32> -> vector<8x4xf32>
    %21 = vector.extract_strided_slice %20 {offsets = [0, 0], sizes = [4, 4], strides = [1, 1]} : vector<8x4xf32> to vector<4x4xf32>
    %cst_7 = arith.constant dense<0.000000e+00> : vector<4xf32>
    %22 = vector.multi_reduction <add>, %21, %cst_7 [0] : vector<4x4xf32> to vector<4xf32>
    %23 = vector.shape_cast %22 : vector<4xf32> to vector<1x4xf32>
    %cst_8 = arith.constant 1.280000e+02 : f32
    %24 = vector.broadcast %cst_8 : f32 to vector<1x4xf32>
    %25 = arith.divf %23, %24 : vector<1x4xf32>
    %26 = vector.extract_strided_slice %20 {offsets = [4, 0], sizes = [4, 4], strides = [1, 1]} : vector<8x4xf32> to vector<4x4xf32>
    %cst_9 = arith.constant dense<0.000000e+00> : vector<4xf32>
    %27 = vector.multi_reduction <add>, %26, %cst_9 [0] : vector<4x4xf32> to vector<4xf32>
    %28 = vector.shape_cast %27 : vector<4xf32> to vector<1x4xf32>
    %cst_10 = arith.constant 1.280000e+02 : f32
    %29 = vector.broadcast %cst_10 : f32 to vector<1x4xf32>
    %30 = arith.divf %28, %29 : vector<1x4xf32>
    %31 = arith.mulf %25, %25 : vector<1x4xf32>
    %32 = arith.subf %30, %31 : vector<1x4xf32>
    %cst_11 = arith.constant 0.000000e+00 : f32
    %33 = vector.broadcast %cst_11 : f32 to vector<1x4xf32>
    %34 = arith.maximumf %32, %33 : vector<1x4xf32>
    %cst_12 = arith.constant 9.99999974E-6 : f32
    %35 = vector.broadcast %cst_12 : f32 to vector<1x4xf32>
    %36 = arith.addf %34, %35 : vector<1x4xf32>
    %37 = math.rsqrt %36 : vector<1x4xf32>
    %c528 = arith.constant 528 : index
    %c0_13 = arith.constant 0 : index
    %38 = vector.load %arg2[%c528, %c0_13] : memref<544x512xbf16, #tpu.memory_space<vmem>>, vector<1x4xbf16>
    %39 = arith.extf %38 : vector<1x4xbf16> to vector<1x4xf32>
    %c529 = arith.constant 529 : index
    %c0_14 = arith.constant 0 : index
    %40 = vector.load %arg2[%c529, %c0_14] : memref<544x512xbf16, #tpu.memory_space<vmem>>, vector<1x4xbf16>
    %41 = arith.extf %40 : vector<1x4xbf16> to vector<1x4xf32>
    %42 = arith.addf %39, %41 : vector<1x4xf32>
    %c530 = arith.constant 530 : index
    %c0_15 = arith.constant 0 : index
    %43 = vector.load %arg2[%c530, %c0_15] : memref<544x512xbf16, #tpu.memory_space<vmem>>, vector<1x4xbf16>
    %44 = arith.extf %43 : vector<1x4xbf16> to vector<1x4xf32>
    %c531 = arith.constant 531 : index
    %c0_16 = arith.constant 0 : index
    %45 = vector.load %arg2[%c531, %c0_16] : memref<544x512xbf16, #tpu.memory_space<vmem>>, vector<1x4xbf16>
    %46 = arith.extf %45 : vector<1x4xbf16> to vector<1x4xf32>
    %47 = arith.addf %44, %46 : vector<1x4xf32>
    %48 = arith.mulf %37, %42 : vector<1x4xf32>
    %49 = arith.mulf %25, %48 : vector<1x4xf32>
    %50 = arith.subf %47, %49 : vector<1x4xf32>
    %51 = arith.truncf %48 : vector<1x4xf32> to vector<1x4xbf16>
    %52 = arith.extf %51 : vector<1x4xbf16> to vector<1x4xf32>
    %53 = arith.subf %48, %52 : vector<1x4xf32>
    %54 = arith.truncf %53 : vector<1x4xf32> to vector<1x4xbf16>
    %55 = arith.truncf %50 : vector<1x4xf32> to vector<1x4xbf16>
    %56 = arith.extf %55 : vector<1x4xbf16> to vector<1x4xf32>
    %57 = arith.subf %50, %56 : vector<1x4xf32>
    %58 = arith.truncf %57 : vector<1x4xf32> to vector<1x4xbf16>
    %59 = tpu.concatenate %51, %54, %55, %58 in 0 : vector<1x4xbf16>, vector<1x4xbf16>, vector<1x4xbf16>, vector<1x4xbf16> -> vector<4x4xbf16>
    %c448 = arith.constant 448 : index
    %c0_17 = arith.constant 0 : index
    %60 = vector.load %arg2[%c448, %c0_17] : memref<544x512xbf16, #tpu.memory_space<vmem>>, vector<4x256xbf16>
    %cst_18 = arith.constant dense<0.000000e+00> : vector<4x256xf32>
    %61 = tpu.matmul %59, %60, %cst_18 {dimension_numbers = #tpu.dot_dimension_numbers<[1], [0], [0], [1], [0, 0, 1, 1], [], []>} : vector<4x4xbf16>, vector<4x256xbf16>, vector<4x256xf32> -> vector<4x256xf32>
    %62 = vector.extract_strided_slice %61 {offsets = [0, 0], sizes = [1, 256], strides = [1, 1]} : vector<4x256xf32> to vector<1x256xf32>
    %63 = vector.extract_strided_slice %61 {offsets = [1, 0], sizes = [1, 256], strides = [1, 1]} : vector<4x256xf32> to vector<1x256xf32>
    %64 = arith.addf %62, %63 : vector<1x256xf32>
    %65 = vector.extract_strided_slice %61 {offsets = [2, 0], sizes = [1, 256], strides = [1, 1]} : vector<4x256xf32> to vector<1x256xf32>
    %66 = vector.extract_strided_slice %61 {offsets = [3, 0], sizes = [1, 256], strides = [1, 1]} : vector<4x256xf32> to vector<1x256xf32>
    %67 = arith.addf %65, %66 : vector<1x256xf32>
    %68 = vector.broadcast %64 : vector<1x256xf32> to vector<2x256xf32>
    %69 = arith.mulf %8, %68 : vector<2x256xf32>
    %70 = vector.broadcast %67 : vector<1x256xf32> to vector<2x256xf32>
    %71 = arith.addf %69, %70 : vector<2x256xf32>
    %cst_19 = arith.constant 0.000000e+00 : f32
    %72 = vector.broadcast %cst_19 : f32 to vector<2x256xf32>
    %73 = arith.maximumf %71, %72 : vector<2x256xf32>
    %74 = arith.truncf %73 : vector<2x256xf32> to vector<2x256xbf16>
    %c0_20 = arith.constant 0 : index
    %c0_21 = arith.constant 0 : index
    %75 = vector.load %arg2[%c0_20, %c0_21] : memref<544x512xbf16, #tpu.memory_space<vmem>>, vector<256x384xbf16>
    %cst_22 = arith.constant dense<0.000000e+00> : vector<2x384xf32>
    %76 = tpu.matmul %74, %75, %cst_22 {dimension_numbers = #tpu.dot_dimension_numbers<[1], [0], [0], [1], [0, 0, 1, 1], [], []>} : vector<2x256xbf16>, vector<256x384xbf16>, vector<2x384xf32> -> vector<2x384xf32>
    %77 = vector.extract_strided_slice %76 {offsets = [0, 0], sizes = [2, 128], strides = [1, 1]} : vector<2x384xf32> to vector<2x128xf32>
    %78 = vector.extract_strided_slice %76 {offsets = [0, 128], sizes = [2, 128], strides = [1, 1]} : vector<2x384xf32> to vector<2x128xf32>
    %79 = arith.maximumf %77, %78 : vector<2x128xf32>
    %80 = vector.extract_strided_slice %76 {offsets = [0, 256], sizes = [2, 128], strides = [1, 1]} : vector<2x384xf32> to vector<2x128xf32>
    %81 = arith.maximumf %79, %80 : vector<2x128xf32>
    %82 = arith.truncf %81 : vector<2x128xf32> to vector<2x128xbf16>
    %c2816 = arith.constant 2816 : index
    %c0_23 = arith.constant 0 : index
    %83 = vector.load %arg1[%c2816, %c0_23] : memref<3008x128xbf16, #tpu.memory_space<vmem>>, vector<128x128xbf16>
    %cst_24 = arith.constant dense<0.000000e+00> : vector<2x128xf32>
    %84 = tpu.matmul %82, %83, %cst_24 {dimension_numbers = #tpu.dot_dimension_numbers<[1], [0], [0], [1], [0, 0, 1, 1], [], []>} : vector<2x128xbf16>, vector<128x128xbf16>, vector<2x128xf32> -> vector<2x128xf32>
    %85 = arith.mulf %84, %84 : vector<2x128xf32>
    %86 = arith.truncf %84 : vector<2x128xf32> to vector<2x128xbf16>
    %87 = arith.extf %86 : vector<2x128xbf16> to vector<2x128xf32>
    %88 = arith.subf %84, %87 : vector<2x128xf32>
    %89 = arith.truncf %88 : vector<2x128xf32> to vector<2x128xbf16>
    %90 = arith.truncf %85 : vector<2x128xf32> to vector<2x128xbf16>
    %91 = arith.extf %90 : vector<2x128xbf16> to vector<2x128xf32>
    %92 = arith.subf %85, %91 : vector<2x128xf32>
    %93 = arith.truncf %92 : vector<2x128xf32> to vector<2x128xbf16>
    %94 = tpu.concatenate %86, %89, %90, %93 in 0 : vector<2x128xbf16>, vector<2x128xbf16>, vector<2x128xbf16>, vector<2x128xbf16> -> vector<8x128xbf16>
    %c256 = arith.constant 256 : index
    %c384_25 = arith.constant 384 : index
    %95 = vector.load %arg2[%c256, %c384_25] : memref<544x512xbf16, #tpu.memory_space<vmem>>, vector<128x8xbf16>
    %cst_26 = arith.constant dense<0.000000e+00> : vector<8x8xf32>
    %96 = tpu.matmul %94, %95, %cst_26 {dimension_numbers = #tpu.dot_dimension_numbers<[1], [0], [0], [1], [0, 0, 1, 1], [], []>} : vector<8x128xbf16>, vector<128x8xbf16>, vector<8x8xf32> -> vector<8x8xf32>
    %97 = vector.extract_strided_slice %96 {offsets = [0, 0], sizes = [4, 8], strides = [1, 1]} : vector<8x8xf32> to vector<4x8xf32>
    %cst_27 = arith.constant dense<0.000000e+00> : vector<8xf32>
    %98 = vector.multi_reduction <add>, %97, %cst_27 [0] : vector<4x8xf32> to vector<8xf32>
    %99 = vector.shape_cast %98 : vector<8xf32> to vector<1x8xf32>
    %cst_28 = arith.constant 3.200000e+01 : f32
    %100 = vector.broadcast %cst_28 : f32 to vector<1x8xf32>
    %101 = arith.divf %99, %100 : vector<1x8xf32>
    %102 = vector.extract_strided_slice %96 {offsets = [4, 0], sizes = [4, 8], strides = [1, 1]} : vector<8x8xf32> to vector<4x8xf32>
    %cst_29 = arith.constant dense<0.000000e+00> : vector<8xf32>
    %103 = vector.multi_reduction <add>, %102, %cst_29 [0] : vector<4x8xf32> to vector<8xf32>
    %104 = vector.shape_cast %103 : vector<8xf32> to vector<1x8xf32>
    %cst_30 = arith.constant 3.200000e+01 : f32
    %105 = vector.broadcast %cst_30 : f32 to vector<1x8xf32>
    %106 = arith.divf %104, %105 : vector<1x8xf32>
    %107 = arith.mulf %101, %101 : vector<1x8xf32>
    %108 = arith.subf %106, %107 : vector<1x8xf32>
    %cst_31 = arith.constant 0.000000e+00 : f32
    %109 = vector.broadcast %cst_31 : f32 to vector<1x8xf32>
    %110 = arith.maximumf %108, %109 : vector<1x8xf32>
    %cst_32 = arith.constant 9.99999974E-6 : f32
    %111 = vector.broadcast %cst_32 : f32 to vector<1x8xf32>
    %112 = arith.addf %110, %111 : vector<1x8xf32>
    %113 = math.rsqrt %112 : vector<1x8xf32>
    %c532 = arith.constant 532 : index
    %c0_33 = arith.constant 0 : index
    %114 = vector.load %arg2[%c532, %c0_33] : memref<544x512xbf16, #tpu.memory_space<vmem>>, vector<1x8xbf16>
    %115 = arith.extf %114 : vector<1x8xbf16> to vector<1x8xf32>
    %c533 = arith.constant 533 : index
    %c0_34 = arith.constant 0 : index
    %116 = vector.load %arg2[%c533, %c0_34] : memref<544x512xbf16, #tpu.memory_space<vmem>>, vector<1x8xbf16>
    %117 = arith.extf %116 : vector<1x8xbf16> to vector<1x8xf32>
    %118 = arith.addf %115, %117 : vector<1x8xf32>
    %c534 = arith.constant 534 : index
    %c0_35 = arith.constant 0 : index
    %119 = vector.load %arg2[%c534, %c0_35] : memref<544x512xbf16, #tpu.memory_space<vmem>>, vector<1x8xbf16>
    %120 = arith.extf %119 : vector<1x8xbf16> to vector<1x8xf32>
    %c535 = arith.constant 535 : index
    %c0_36 = arith.constant 0 : index
    %121 = vector.load %arg2[%c535, %c0_36] : memref<544x512xbf16, #tpu.memory_space<vmem>>, vector<1x8xbf16>
    %122 = arith.extf %121 : vector<1x8xbf16> to vector<1x8xf32>
    %123 = arith.addf %120, %122 : vector<1x8xf32>
    %124 = arith.mulf %113, %118 : vector<1x8xf32>
    %125 = arith.mulf %101, %124 : vector<1x8xf32>
    %126 = arith.subf %123, %125 : vector<1x8xf32>
    %127 = arith.truncf %124 : vector<1x8xf32> to vector<1x8xbf16>
    %128 = arith.extf %127 : vector<1x8xbf16> to vector<1x8xf32>
    %129 = arith.subf %124, %128 : vector<1x8xf32>
    %130 = arith.truncf %129 : vector<1x8xf32> to vector<1x8xbf16>
    %131 = arith.truncf %126 : vector<1x8xf32> to vector<1x8xbf16>
    %132 = arith.extf %131 : vector<1x8xbf16> to vector<1x8xf32>
    %133 = arith.subf %126, %132 : vector<1x8xf32>
    %134 = arith.truncf %133 : vector<1x8xf32> to vector<1x8xbf16>
    %135 = tpu.concatenate %127, %130, %131, %134 in 0 : vector<1x8xbf16>, vector<1x8xbf16>, vector<1x8xbf16>, vector<1x8xbf16> -> vector<4x8xbf16>
    %c464 = arith.constant 464 : index
    %c0_37 = arith.constant 0 : index
    %136 = vector.load %arg2[%c464, %c0_37] : memref<544x512xbf16, #tpu.memory_space<vmem>>, vector<8x128xbf16>
    %cst_38 = arith.constant dense<0.000000e+00> : vector<4x128xf32>
    %137 = tpu.matmul %135, %136, %cst_38 {dimension_numbers = #tpu.dot_dimension_numbers<[1], [0], [0], [1], [0, 0, 1, 1], [], []>} : vector<4x8xbf16>, vector<8x128xbf16>, vector<4x128xf32> -> vector<4x128xf32>
    %138 = vector.extract_strided_slice %137 {offsets = [0, 0], sizes = [1, 128], strides = [1, 1]} : vector<4x128xf32> to vector<1x128xf32>
    %139 = vector.extract_strided_slice %137 {offsets = [1, 0], sizes = [1, 128], strides = [1, 1]} : vector<4x128xf32> to vector<1x128xf32>
    %140 = arith.addf %138, %139 : vector<1x128xf32>
    %141 = vector.extract_strided_slice %137 {offsets = [2, 0], sizes = [1, 128], strides = [1, 1]} : vector<4x128xf32> to vector<1x128xf32>
    %142 = vector.extract_strided_slice %137 {offsets = [3, 0], sizes = [1, 128], strides = [1, 1]} : vector<4x128xf32> to vector<1x128xf32>
    %143 = arith.addf %141, %142 : vector<1x128xf32>
    %144 = vector.broadcast %140 : vector<1x128xf32> to vector<2x128xf32>
    %145 = arith.mulf %84, %144 : vector<2x128xf32>
    %146 = vector.broadcast %143 : vector<1x128xf32> to vector<2x128xf32>
    %147 = arith.addf %145, %146 : vector<2x128xf32>
    %cst_39 = arith.constant 0.000000e+00 : f32
    %148 = vector.broadcast %cst_39 : f32 to vector<2x128xf32>
    %149 = arith.maximumf %147, %148 : vector<2x128xf32>
    %150 = arith.truncf %149 : vector<2x128xf32> to vector<2x128xbf16>
    %c256_40 = arith.constant 256 : index
    %c0_41 = arith.constant 0 : index
    %151 = vector.load %arg2[%c256_40, %c0_41] : memref<544x512xbf16, #tpu.memory_space<vmem>>, vector<128x384xbf16>
    %cst_42 = arith.constant dense<0.000000e+00> : vector<2x384xf32>
    %152 = tpu.matmul %150, %151, %cst_42 {dimension_numbers = #tpu.dot_dimension_numbers<[1], [0], [0], [1], [0, 0, 1, 1], [], []>} : vector<2x128xbf16>, vector<128x384xbf16>, vector<2x384xf32> -> vector<2x384xf32>
    %153 = vector.extract_strided_slice %152 {offsets = [0, 0], sizes = [2, 64], strides = [1, 1]} : vector<2x384xf32> to vector<2x64xf32>
    %154 = vector.extract_strided_slice %152 {offsets = [0, 128], sizes = [2, 64], strides = [1, 1]} : vector<2x384xf32> to vector<2x64xf32>
    %155 = arith.maximumf %153, %154 : vector<2x64xf32>
    %156 = vector.extract_strided_slice %152 {offsets = [0, 256], sizes = [2, 64], strides = [1, 1]} : vector<2x384xf32> to vector<2x64xf32>
    %157 = arith.maximumf %155, %156 : vector<2x64xf32>
    %158 = arith.truncf %157 : vector<2x64xf32> to vector<2x64xbf16>
    %c2944 = arith.constant 2944 : index
    %c0_43 = arith.constant 0 : index
    %159 = vector.load %arg1[%c2944, %c0_43] : memref<3008x128xbf16, #tpu.memory_space<vmem>>, vector<64x64xbf16>
    %cst_44 = arith.constant dense<0.000000e+00> : vector<2x64xf32>
    %160 = tpu.matmul %158, %159, %cst_44 {dimension_numbers = #tpu.dot_dimension_numbers<[1], [0], [0], [1], [0, 0, 1, 1], [], []>} : vector<2x64xbf16>, vector<64x64xbf16>, vector<2x64xf32> -> vector<2x64xf32>
    %161 = arith.mulf %160, %160 : vector<2x64xf32>
    %162 = arith.truncf %160 : vector<2x64xf32> to vector<2x64xbf16>
    %163 = arith.extf %162 : vector<2x64xbf16> to vector<2x64xf32>
    %164 = arith.subf %160, %163 : vector<2x64xf32>
    %165 = arith.truncf %164 : vector<2x64xf32> to vector<2x64xbf16>
    %166 = arith.truncf %161 : vector<2x64xf32> to vector<2x64xbf16>
    %167 = arith.extf %166 : vector<2x64xbf16> to vector<2x64xf32>
    %168 = arith.subf %161, %167 : vector<2x64xf32>
    %169 = arith.truncf %168 : vector<2x64xf32> to vector<2x64xbf16>
    %170 = tpu.concatenate %162, %165, %166, %169 in 0 : vector<2x64xbf16>, vector<2x64xbf16>, vector<2x64xbf16>, vector<2x64xbf16> -> vector<8x64xbf16>
    %c384_45 = arith.constant 384 : index
    %c384_46 = arith.constant 384 : index
    %171 = vector.load %arg2[%c384_45, %c384_46] : memref<544x512xbf16, #tpu.memory_space<vmem>>, vector<64x16xbf16>
    %cst_47 = arith.constant dense<0.000000e+00> : vector<8x16xf32>
    %172 = tpu.matmul %170, %171, %cst_47 {dimension_numbers = #tpu.dot_dimension_numbers<[1], [0], [0], [1], [0, 0, 1, 1], [], []>} : vector<8x64xbf16>, vector<64x16xbf16>, vector<8x16xf32> -> vector<8x16xf32>
    %173 = vector.extract_strided_slice %172 {offsets = [0, 0], sizes = [4, 16], strides = [1, 1]} : vector<8x16xf32> to vector<4x16xf32>
    %cst_48 = arith.constant dense<0.000000e+00> : vector<16xf32>
    %174 = vector.multi_reduction <add>, %173, %cst_48 [0] : vector<4x16xf32> to vector<16xf32>
    %175 = vector.shape_cast %174 : vector<16xf32> to vector<1x16xf32>
    %cst_49 = arith.constant 8.000000e+00 : f32
    %176 = vector.broadcast %cst_49 : f32 to vector<1x16xf32>
    %177 = arith.divf %175, %176 : vector<1x16xf32>
    %178 = vector.extract_strided_slice %172 {offsets = [4, 0], sizes = [4, 16], strides = [1, 1]} : vector<8x16xf32> to vector<4x16xf32>
    %cst_50 = arith.constant dense<0.000000e+00> : vector<16xf32>
    %179 = vector.multi_reduction <add>, %178, %cst_50 [0] : vector<4x16xf32> to vector<16xf32>
    %180 = vector.shape_cast %179 : vector<16xf32> to vector<1x16xf32>
    %cst_51 = arith.constant 8.000000e+00 : f32
    %181 = vector.broadcast %cst_51 : f32 to vector<1x16xf32>
    %182 = arith.divf %180, %181 : vector<1x16xf32>
    %183 = arith.mulf %177, %177 : vector<1x16xf32>
    %184 = arith.subf %182, %183 : vector<1x16xf32>
    %cst_52 = arith.constant 0.000000e+00 : f32
    %185 = vector.broadcast %cst_52 : f32 to vector<1x16xf32>
    %186 = arith.maximumf %184, %185 : vector<1x16xf32>
    %cst_53 = arith.constant 9.99999974E-6 : f32
    %187 = vector.broadcast %cst_53 : f32 to vector<1x16xf32>
    %188 = arith.addf %186, %187 : vector<1x16xf32>
    %189 = math.rsqrt %188 : vector<1x16xf32>
    %c536 = arith.constant 536 : index
    %c0_54 = arith.constant 0 : index
    %190 = vector.load %arg2[%c536, %c0_54] : memref<544x512xbf16, #tpu.memory_space<vmem>>, vector<1x16xbf16>
    %191 = arith.extf %190 : vector<1x16xbf16> to vector<1x16xf32>
    %c537 = arith.constant 537 : index
    %c0_55 = arith.constant 0 : index
    %192 = vector.load %arg2[%c537, %c0_55] : memref<544x512xbf16, #tpu.memory_space<vmem>>, vector<1x16xbf16>
    %193 = arith.extf %192 : vector<1x16xbf16> to vector<1x16xf32>
    %194 = arith.addf %191, %193 : vector<1x16xf32>
    %c538 = arith.constant 538 : index
    %c0_56 = arith.constant 0 : index
    %195 = vector.load %arg2[%c538, %c0_56] : memref<544x512xbf16, #tpu.memory_space<vmem>>, vector<1x16xbf16>
    %196 = arith.extf %195 : vector<1x16xbf16> to vector<1x16xf32>
    %c539 = arith.constant 539 : index
    %c0_57 = arith.constant 0 : index
    %197 = vector.load %arg2[%c539, %c0_57] : memref<544x512xbf16, #tpu.memory_space<vmem>>, vector<1x16xbf16>
    %198 = arith.extf %197 : vector<1x16xbf16> to vector<1x16xf32>
    %199 = arith.addf %196, %198 : vector<1x16xf32>
    %200 = arith.mulf %189, %194 : vector<1x16xf32>
    %201 = arith.mulf %177, %200 : vector<1x16xf32>
    %202 = arith.subf %199, %201 : vector<1x16xf32>
    %203 = arith.truncf %200 : vector<1x16xf32> to vector<1x16xbf16>
    %204 = arith.extf %203 : vector<1x16xbf16> to vector<1x16xf32>
    %205 = arith.subf %200, %204 : vector<1x16xf32>
    %206 = arith.truncf %205 : vector<1x16xf32> to vector<1x16xbf16>
    %207 = arith.truncf %202 : vector<1x16xf32> to vector<1x16xbf16>
    %208 = arith.extf %207 : vector<1x16xbf16> to vector<1x16xf32>
    %209 = arith.subf %202, %208 : vector<1x16xf32>
    %210 = arith.truncf %209 : vector<1x16xf32> to vector<1x16xbf16>
    %211 = tpu.concatenate %203, %206, %207, %210 in 0 : vector<1x16xbf16>, vector<1x16xbf16>, vector<1x16xbf16>, vector<1x16xbf16> -> vector<4x16xbf16>
    %c480 = arith.constant 480 : index
    %c0_58 = arith.constant 0 : index
    %212 = vector.load %arg2[%c480, %c0_58] : memref<544x512xbf16, #tpu.memory_space<vmem>>, vector<16x64xbf16>
    %cst_59 = arith.constant dense<0.000000e+00> : vector<4x64xf32>
    %213 = tpu.matmul %211, %212, %cst_59 {dimension_numbers = #tpu.dot_dimension_numbers<[1], [0], [0], [1], [0, 0, 1, 1], [], []>} : vector<4x16xbf16>, vector<16x64xbf16>, vector<4x64xf32> -> vector<4x64xf32>
    %214 = vector.extract_strided_slice %213 {offsets = [0, 0], sizes = [1, 64], strides = [1, 1]} : vector<4x64xf32> to vector<1x64xf32>
    %215 = vector.extract_strided_slice %213 {offsets = [1, 0], sizes = [1, 64], strides = [1, 1]} : vector<4x64xf32> to vector<1x64xf32>
    %216 = arith.addf %214, %215 : vector<1x64xf32>
    %217 = vector.extract_strided_slice %213 {offsets = [2, 0], sizes = [1, 64], strides = [1, 1]} : vector<4x64xf32> to vector<1x64xf32>
    %218 = vector.extract_strided_slice %213 {offsets = [3, 0], sizes = [1, 64], strides = [1, 1]} : vector<4x64xf32> to vector<1x64xf32>
    %219 = arith.addf %217, %218 : vector<1x64xf32>
    %220 = vector.broadcast %216 : vector<1x64xf32> to vector<2x64xf32>
    %221 = arith.mulf %160, %220 : vector<2x64xf32>
    %222 = vector.broadcast %219 : vector<1x64xf32> to vector<2x64xf32>
    %223 = arith.addf %221, %222 : vector<2x64xf32>
    %cst_60 = arith.constant 0.000000e+00 : f32
    %224 = vector.broadcast %cst_60 : f32 to vector<2x64xf32>
    %225 = arith.maximumf %223, %224 : vector<2x64xf32>
    %226 = arith.truncf %225 : vector<2x64xf32> to vector<2x64xbf16>
    %c384_61 = arith.constant 384 : index
    %c0_62 = arith.constant 0 : index
    %227 = vector.load %arg2[%c384_61, %c0_62] : memref<544x512xbf16, #tpu.memory_space<vmem>>, vector<64x384xbf16>
    %cst_63 = arith.constant dense<0.000000e+00> : vector<2x384xf32>
    %228 = tpu.matmul %226, %227, %cst_63 {dimension_numbers = #tpu.dot_dimension_numbers<[1], [0], [0], [1], [0, 0, 1, 1], [], []>} : vector<2x64xbf16>, vector<64x384xbf16>, vector<2x384xf32> -> vector<2x384xf32>
    %229 = vector.extract_strided_slice %228 {offsets = [0, 0], sizes = [2, 32], strides = [1, 1]} : vector<2x384xf32> to vector<2x32xf32>
    %230 = vector.extract_strided_slice %228 {offsets = [0, 128], sizes = [2, 32], strides = [1, 1]} : vector<2x384xf32> to vector<2x32xf32>
    %231 = arith.maximumf %229, %230 : vector<2x32xf32>
    %232 = vector.extract_strided_slice %228 {offsets = [0, 256], sizes = [2, 32], strides = [1, 1]} : vector<2x384xf32> to vector<2x32xf32>
    %233 = arith.maximumf %231, %232 : vector<2x32xf32>
    %c540 = arith.constant 540 : index
    %c0_64 = arith.constant 0 : index
    %234 = vector.load %arg2[%c540, %c0_64] : memref<544x512xbf16, #tpu.memory_space<vmem>>, vector<1x12xbf16>
    %235 = arith.extf %234 : vector<1x12xbf16> to vector<1x12xf32>
    %c541 = arith.constant 541 : index
    %c0_65 = arith.constant 0 : index
    %236 = vector.load %arg2[%c541, %c0_65] : memref<544x512xbf16, #tpu.memory_space<vmem>>, vector<1x12xbf16>
    %237 = arith.extf %236 : vector<1x12xbf16> to vector<1x12xf32>
    %238 = arith.addf %235, %237 : vector<1x12xf32>
    %239 = arith.truncf %233 : vector<2x32xf32> to vector<2x32xbf16>
    %c496 = arith.constant 496 : index
    %c0_66 = arith.constant 0 : index
    %240 = vector.load %arg2[%c496, %c0_66] : memref<544x512xbf16, #tpu.memory_space<vmem>>, vector<32x12xbf16>
    %cst_67 = arith.constant dense<0.000000e+00> : vector<2x12xf32>
    %241 = tpu.matmul %239, %240, %cst_67 {dimension_numbers = #tpu.dot_dimension_numbers<[1], [0], [0], [1], [0, 0, 1, 1], [], []>} : vector<2x32xbf16>, vector<32x12xbf16>, vector<2x12xf32> -> vector<2x12xf32>
    %242 = vector.broadcast %238 : vector<1x12xf32> to vector<2x12xf32>
    %243 = arith.addf %241, %242 : vector<2x12xf32>
    %c0_68 = arith.constant 0 : index
    %c0_69 = arith.constant 0 : index
    %244 = vector.load %arg3[%c0_68, %c0_69] : memref<2x12xf32, #tpu.memory_space<vmem>>, vector<2x12xf32>
    tpu.vector_store %arg3[%c0_68, %c0_69], %243 {strides = array<i32>} : memref<2x12xf32, #tpu.memory_space<vmem>>, vector<2x12xf32>,
    return
  }
}

</mosaic_0001>

<bundles_post_ra>
// kernel: tpu_custom_call.1
= control target key start
LH: loop header
LB: loop body
LE: loop exit
PB: predicated region body
PF: predicated region fallthrough
CT: control target
= control target key end

     0   :  { %8 = vsyncpa [#allocation3], 0  ;;  %s5512_s0 = inlined_call_operand.hbm [shape: f32[2,2432], index: 0, kind: input, shape index: {}]   ;;  %s5513_s1 = inlined_call_operand.hbm [shape: bf16[3008,128], index: 1, kind: input, shape index: {}]   ;;  %s5514_s2 = inlined_call_operand.hbm [shape: bf16[544,512], index: 2, kind: input, shape index: {}]   ;;  %s5515_s3 = inlined_call_operand.hbm [shape: f32[2,12], index: 3, kind: output, shape index: {}]  }
   0x1   :  { %9 = vsyncpa [#allocation6], 0 }
   0x2   :  { %10 = vsyncpa [#allocation4], 0  ;;  %s5274_s12 = smov [#allocation5]  }
   0x3   :  { %s26_s13 = sshll.u32 %s5274_s12, 4  ;;  %s27_s13 = int_to_ptr.vmem [resolvable:$true] %s26_s13 }
   0x4   :  { %s5196_s14 = scalar_lea.vmem %s27_s13, 24064  ;;  %p5201_p1 = scmp.lt.s32.totalorder %s27_s13, %s27_s13 }
   0x5   :  { %p5197_p0 = scmp.ne.s32.totalorder %s27_s13, %s5196_s14  ;;  %p5202_p2 = scmp.lt.s32.totalorder %s5196_s14, %s5196_s14 }
   0x7   :  { %p5203_p3 = por %p5202_p2, %p5201_p1 }
   0x9   :  { %p5204_p4 = pnand %p5203_p3, %p5197_p0 }
   0xb   :  { %5207 = shalt.err (!%p5204_p4)
}
   0xc   :  { %s5275_s15 = smov 64   ;;  %s5276_s16 = smov 4  }
   0xd   :  { %32 = dma.hbm_to_vmem [thread:$0]  %s5513_s1, 24064, %s27_s13, [#allocation6], %s5275_s15, %s5275_s15, %s5276_s16  }
   0xe   :  { %s5277_s19 = smov [#allocation2]   ;;  %s5278_s21 = smov [#allocation7]  }
   0xf   :  { %s17_s20 = sshll.u32 %s5277_s19, 4  ;;  %s38_s22 = sshll.u32 %s5278_s21, 4  ;;  %s18_s20 = int_to_ptr.vmem [resolvable:$true] %s17_s20  ;;  %s39_s22 = int_to_ptr.vmem [resolvable:$true] %s38_s22 }
  0x10   :  { %s5216_s23 = scalar_lea.vmem %s18_s20, 608  ;;  %p5221_p6 = scmp.lt.s32.totalorder %s18_s20, %s18_s20 }
  0x11   :  { %p5217_p5 = scmp.ne.s32.totalorder %s18_s20, %s5216_s23  ;;  %p5222_p7 = scmp.lt.s32.totalorder %s5216_s23, %s5216_s23 }
  0x13   :  { %p5223_p8 = por %p5222_p7, %p5221_p6 }
  0x15   :  { %p5224_p9 = pnand %p5223_p8, %p5217_p5 }
  0x17   :  { %5227 = shalt.err (!%p5224_p9)
}
  0x18   :  { %20 = dma.hbm_to_vmem [thread:$0]  %s5512_s0, 608, %s18_s20, [#allocation3]  }
  0x19   :  { %s5236_s26 = scalar_lea.vmem %s39_s22, 17408  ;;  %p5241_p11 = scmp.lt.s32.totalorder %s39_s22, %s39_s22 }
  0x1a   :  { %p5237_p10 = scmp.ne.s32.totalorder %s39_s22, %s5236_s26  ;;  %p5242_p12 = scmp.lt.s32.totalorder %s5236_s26, %s5236_s26 }
  0x1c   :  { %p5243_p13 = por %p5242_p12, %p5241_p11 }
  0x1e   :  { %p5244_p0 = pnand %p5243_p13, %p5237_p10 }
  0x20   :  { %5247 = shalt.err (!%p5244_p0)
}
  0x21   :  { %s5279_s1 = smov 256   ;;  %s5280_s27 = smov 16  }
  0x22   :  { %44 = dma.hbm_to_vmem [thread:$0]  %s5514_s2, 17408, %s39_s22, [#allocation6], %s5279_s1, %s5279_s1, %s5280_s27  }
  0x23   :  { %5268 = dma.done.wait [#allocation3], 608  }
  0x24   :  { %5269 = vsyncadd [#allocation3], 4294966688 }
  0x25   :  { %5270 = dma.done.wait [#allocation6], 41472  }
  0x26   :  { %5271 = vsyncadd [#allocation6], 4294925824  ;;  %v4844_v0 = vld [vmem:[#allocation5 + $0x78] sm:$0xff]   ;;  %v4848_v4 = vld [vmem:[#allocation5 + $0x70] sm:$0xff]   ;;  %v5281_v22 = vmov 1983009808   ;;  %v69_v24 = vlaneseq }
  0x27   :  { %v4845_v1 = vld [vmem:[#allocation5 + $0xf8] sm:$0xff]   ;;  %4345 = vmatprep.subr.bf16.mxu0 %v4844_v0  ;;  %v4849_v5 = vld [vmem:[#allocation5 + $0xf0] sm:$0xff]   ;;  %v4852_v8 = vld [vmem:[#allocation5 + $0x68] sm:$0xff]   ;;  %v67_v23 = vunpack.c.l.s4 %v5281_v22  ;;  %vm5283_vm0 = vmmov 0   ;;  %vm2105_vm1 = vcmask 1040384   ;;  %vm2112_vm2 = vcmask 1041408  }
  0x28   :  { %v4846_v2 = vld [vmem:[#allocation5 + $0x38] sm:$0xff]   ;;  %4367 = vmatprep.subr.bf16.mxu1 %v4845_v1  ;;  %v4850_v6 = vld [vmem:[#allocation5 + $0x30] sm:$0xff]   ;;  %v4853_v9 = vld [vmem:[#allocation5 + $0xe8] sm:$0xff]   ;;  %v5315_v30 = vshrl.u32 %v69_v24, 7  ;;  %vm2117_vm3 = vcmask 1042432   ;;  %vm2292_vm4 = vcmask 27648  }
  0x29   :  { %v4847_v3 = vld [vmem:[#allocation5 + $0xb8] sm:$0xff]   ;;  %4346 = vmatpush3.bf16.msra.mxu0 %v4846_v2  ;;  %v4851_v7 = vld [vmem:[#allocation5 + $0xb0] sm:$0xff]   ;;  %v4854_v10 = vld [vmem:[#allocation5 + $0x28] sm:$0xff]   ;;  %v68_v29 = vunpack.c.0.s8 %v67_v23  ;;  %vm2353_vm5 = vsmask.f32 256  ;;  %vm2370_vm9 = vcmask 31744  }
  0x2a   :  { %4368 = vmatpush3.bf16.msra.mxu1 %v4847_v3  ;;  %4347 = vmatprep.subr.bf16.mxu0 %v4848_v4  ;;  %v4855_v11 = vld [vmem:[#allocation5 + $0xa8] sm:$0xff]   ;;  %v4856_v12 = vld [vmem:[#allocation5 + $0x60] sm:$0xff]   ;;  %v4860_v16 = vld [vmem:[#allocation5 + $0x58] sm:$0xff]   ;;  %vm2361_vm7 = vsmask.f32 1280  ;;  %vm3166_vm10 = vcmask 1043456  }
  0x2b   :  { %4369 = vmatprep.subr.bf16.mxu1 %v4849_v5  ;;  %v4857_v13 = vld [vmem:[#allocation5 + $0xe0] sm:$0xff]   ;;  %v4861_v17 = vld [vmem:[#allocation5 + $0xd8] sm:$0xff]   ;;  %v4864_v20 = vld [vmem:[#allocation5 + $0x50] sm:$0xff]   ;;  %v5318_v35 = vsub.s32 %v68_v29, %v5315_v30  ;;  %vm3088_vm11 = vcmask 60416   ;;  %vm3162_vm12 = vcmask 64512   ;;  %vm3502_vm13 = vcmask 523264  }
  0x2c   :  { %v4858_v14 = vld [vmem:[#allocation5 + $0x20] sm:$0xff]   ;;  %v4862_v18 = vld [vmem:[#allocation5 + $0x18] sm:$0xff]   ;;  %v4865_v21 = vld [vmem:[#allocation5 + $0xd0] sm:$0xff]   ;;  %vm3642_vm14 = vcmask 125952   ;;  %vm3716_vm15 = vcmask 130048   ;;  %s5285_s0 = smov [#allocation8]  }
  0x2d   :  { %4348 = vmatpush3.bf16.msra.mxu0 %v4850_v6  ;;  %v4859_v15 = vld [vmem:[#allocation5 + $0xa0] sm:$0xff]   ;;  %v4863_v19 = vld [vmem:[#allocation5 + $0x98] sm:$0xff]   ;;  %v4866_v25 = vld [vmem:[#allocation5 + $0x10] sm:$0xff]   ;;  %s4021_s2 = sshll.u32 %s5285_s0, 4  ;;  %s4022_s2 = int_to_ptr.vmem [resolvable:$true] %s4021_s2 }
  0x2e   :  { %4370 = vmatpush3.bf16.msra.mxu1 %v4851_v7  ;;  %4349 = vmatprep.subr.bf16.mxu0 %v4852_v8  ;;  %v4867_v26 = vld [vmem:[#allocation5 + $0x90] sm:$0xff]   ;;  %v4868_v27 = vld [vmem:[#allocation5 + $0x48] sm:$0xff]   ;;  %v4872_v33 = vld [vmem:[#allocation5 + $0x40] sm:$0xff]   ;;  %s5248_s30 = scalar_lea.vmem %s4022_s2, 32  ;;  %p5253_p2 = scmp.lt.s32.totalorder %s4022_s2, %s4022_s2 }
  0x2f   :  { %4371 = vmatprep.subr.bf16.mxu1 %v4853_v9  ;;  %v4869_v28 = vld [vmem:[#allocation5 + $0xc8] sm:$0xff]   ;;  %v4873_v34 = vld [vmem:[#allocation5 + $0xc0] sm:$0xff]   ;;  %v4877_v41 = vld [vmem:[#allocation5 + $0x178] sm:$0xff]   ;;  %p5249_p1 = scmp.ne.s32.totalorder %s4022_s2, %s5248_s30  ;;  %p5254_p3 = scmp.lt.s32.totalorder %s5248_s30, %s5248_s30 }
  0x30   :  { %v4870_v31 = vld [vmem:[#allocation5 + $0x8] sm:$0xff]   ;;  %v4874_v36 = vld [vmem:[#allocation5] sm:$0xff]   ;;  %v4878_v42 = vld [vmem:[#allocation5 + $0x1f8] sm:$0xff]  }
  0x31   :  { %4350 = vmatpush3.bf16.msra.mxu0 %v4854_v10  ;;  %v4871_v32 = vld [vmem:[#allocation5 + $0x88] sm:$0xff]   ;;  %v4875_v37 = vld [vmem:[#allocation5 + $0x80] sm:$0xff]   ;;  %v4879_v48 = vld [vmem:[#allocation5 + $0x138] sm:$0xff]   ;;  %p5255_p4 = por %p5254_p3, %p5253_p2 }
  0x32   :  { %4372 = vmatpush3.bf16.msra.mxu1 %v4855_v11  ;;  %4351 = vmatprep.subr.bf16.mxu0 %v4856_v12  ;;  %v55_v38 = vld [vmem:[#allocation2] sm:$0xff]  ;;  %v4881_v50 = vld [vmem:[#allocation5 + $0x170] sm:$0xff]   ;;  %v4885_v55 = vld [vmem:[#allocation5 + $0x168] sm:$0xff]  }
  0x33   :  { %4373 = vmatprep.subr.bf16.mxu1 %v4857_v13  ;;  %v72_v39 = vrot.slane %v55_v38, %v5318_v35  ;;  %v65_v40 = vcombine.high %v55_v38, %v55_v38  ;;  %v4880_v52 = vld [vmem:[#allocation5 + $0x1b8] sm:$0xff]   ;;  %v4882_v53 = vld [vmem:[#allocation5 + $0x1f0] sm:$0xff]   ;;  %v4886_v57 = vld [vmem:[#allocation5 + $0x1e8] sm:$0xff]   ;;  %p5256_p5 = pnand %p5255_p4, %p5249_p1 }
  0x34   :  { %v4883_v54 = vld [vmem:[#allocation5 + $0x130] sm:$0xff]   ;;  %v4887_v58 = vld [vmem:[#allocation5 + $0x128] sm:$0xff]   ;;  %v4889_v59 = vld [vmem:[#allocation5 + $0x160] sm:$0xff]  }
  0x35   :  { %4352 = vmatpush3.bf16.msra.mxu0 %v4858_v14  ;;  %v80_v43 = vcombine.high %v72_v39, %v72_v39  ;;  %v79_v44 = vrot.slane %v65_v40, %v5318_v35  ;;  %v168_v45 = vpack.c.bf16 %v72_v39, %v72_v39  ;;  %v4884_v56 = vld [vmem:[#allocation5 + $0x1b0] sm:$0xff]   ;;  %v4888_v60 = vld [vmem:[#allocation5 + $0x1a8] sm:$0xff]   ;;  %v4890_v61 = vld [vmem:[#allocation5 + $0x1e0] sm:$0xff]  }
  0x36   :  { %4374 = vmatpush3.bf16.msra.mxu1 %v4859_v15  ;;  %4353 = vmatprep.subr.bf16.mxu0 %v4860_v16  ;;  %v4891_v62 = vld [vmem:[#allocation5 + $0x120] sm:$0xff]   ;;  %v4893_v63 = vld [vmem:[#allocation5 + $0x158] sm:$0xff]   ;;  %v4897_v3 = vld [vmem:[#allocation5 + $0x150] sm:$0xff]  }
  0x37   :  { %4375 = vmatprep.subr.bf16.mxu1 %v4861_v17  ;;  %v169_v46 = vpack.c.bf16 %v80_v43, %v80_v43  ;;  %v81_v47 = vcombine.high %v79_v44, %v79_v44  ;;  %v170_v49 = vpack.c.bf16 %v79_v44, %v79_v44  ;;  %v4892_v0 = vld [vmem:[#allocation5 + $0x1a0] sm:$0xff]   ;;  %v4894_v1 = vld [vmem:[#allocation5 + $0x1d8] sm:$0xff]   ;;  %v4898_v5 = vld [vmem:[#allocation5 + $0x1d0] sm:$0xff]  }
  0x38   :  { %v4895_v2 = vld [vmem:[#allocation5 + $0x118] sm:$0xff]   ;;  %v4899_v6 = vld [vmem:[#allocation5 + $0x110] sm:$0xff]   ;;  %v4901_v7 = vld [vmem:[#allocation5 + $0x148] sm:$0xff]  }
  0x39   :  { %4354 = vmatpush3.bf16.msra.mxu0 %v4862_v18  ;;  %923 = vmatprep.mubr.bf16.mxu0 %v169_v46  ;;  %v171_v51 = vpack.c.bf16 %v81_v47, %v81_v47  ;;  %v4896_v4 = vld [vmem:[#allocation5 + $0x198] sm:$0xff]   ;;  %v4900_v8 = vld [vmem:[#allocation5 + $0x190] sm:$0xff]   ;;  %v4902_v9 = vld [vmem:[#allocation5 + $0x1c8] sm:$0xff]  }
  0x3a   :  { %4376 = vmatpush3.bf16.msra.mxu1 %v4863_v19  ;;  %4355 = vmatprep.subr.bf16.mxu0 %v4864_v20  ;;  %v4903_v10 = vld [vmem:[#allocation5 + $0x108] sm:$0xff]   ;;  %v4905_v11 = vld [vmem:[#allocation5 + $0x140] sm:$0xff]   ;;  %v4910_v18 = vld [vmem:[#allocation5 + $0x278] sm:$0xff]  }
  0x3b   :  { %4377 = vmatprep.subr.bf16.mxu1 %v4865_v21  ;;  %963 = vmatprep.mubr.bf16.mxu1 %v171_v51  ;;  %v4904_v12 = vld [vmem:[#allocation5 + $0x188] sm:$0xff]   ;;  %v4906_v13 = vld [vmem:[#allocation5 + $0x1c0] sm:$0xff]   ;;  %v4912_v29 = vld [vmem:[#allocation5 + $0x2b8] sm:$0xff]  }
  0x3c   :  { %v56_v14 = vld [vmem:[#allocation2 + $0x8] sm:$0xff]  ;;  %v4922_v40 = vld [vmem:[#allocation5 + $0x258] sm:$0xff]   ;;  %v4925_v43 = vld [vmem:[#allocation5 + $0x250] sm:$0xff]  }
  0x3d   :  { %4356 = vmatpush3.bf16.msra.mxu0 %v4866_v25  ;;  %v4907_v15 = vld [vmem:[#allocation5 + $0x100] sm:$0xff]   ;;  %v89_v16 = vrot.slane %v56_v14, %v5318_v35  ;;  %v82_v17 = vcombine.high %v56_v14, %v56_v14  ;;  %v4911_v25 = vld [vmem:[#allocation5 + $0x238] sm:$0xff]   ;;  %v4918_v38 = vld [vmem:[#allocation5 + $0x2a8] sm:$0xff]  }
  0x3e   :  { %4378 = vmatpush3.bf16.msra.mxu1 %v4867_v26  ;;  %4357 = vmatprep.subr.bf16.mxu0 %v4868_v27  ;;  %v4908_v19 = vld [vmem:[#allocation5 + $0x180] sm:$0xff]   ;;  %v4913_v27 = vld [vmem:[#allocation5 + $0x270] sm:$0xff]   ;;  %v4924_v44 = vld [vmem:[#allocation5 + $0x298] sm:$0xff]  }
  0x3f   :  { %4379 = vmatprep.subr.bf16.mxu1 %v4869_v28  ;;  %v97_v20 = vcombine.high %v89_v16, %v89_v16  ;;  %v96_v21 = vrot.slane %v82_v17, %v5318_v35  ;;  %v172_v22 = vpack.c.bf16 %v89_v16, %v89_v16  ;;  %v4920_v39 = vld [vmem:[#allocation5 + $0x220] sm:$0xff]   ;;  %v4926_v46 = vld [vmem:[#allocation5 + $0x210] sm:$0xff]   ;;  %v4929_v51 = vld [vmem:[#allocation5 + $0x208] sm:$0xff]  }
  0x40   :  { %v4950_v14 = vld [vmem:[#allocation5 + $0x360] sm:$0xff]   ;;  %v4952_v16 = vld [vmem:[#allocation5 + $0x398] sm:$0xff]   ;;  %vm5382_vm6 = vmand %vm2105_vm1, %vm2353_vm5 }
  0x41   :  { %4358 = vmatpush3.bf16.msra.mxu0 %v4870_v31  ;;  %v173_v23 = vpack.c.bf16 %v97_v20, %v97_v20  ;;  %v98_v24 = vcombine.high %v96_v21, %v96_v21  ;;  %v174_v26 = vpack.c.bf16 %v96_v21, %v96_v21  ;;  %v5282_v31 = vmov 0.0   ;;  %v4953_v17 = vld [vmem:[#allocation5 + $0x2d8] sm:$0xff]   ;;  %v4956_v20 = vld [vmem:[#allocation5 + $0x390] sm:$0xff]   ;;  %vm5389_vm8 = vmand %vm2112_vm2, %vm2361_vm7 }
  0x42   :  { %4380 = vmatpush3.bf16.msra.mxu1 %v4871_v32  ;;  %4359 = vmatprep.subr.bf16.mxu0 %v4872_v33  ;;  %v4914_v32 = vld [vmem:[#allocation5 + $0x230] sm:$0xff]   ;;  %v4916_v33 = vld [vmem:[#allocation5 + $0x268] sm:$0xff]  }
  0x43   :  { %4381 = vmatprep.subr.bf16.mxu1 %v4873_v34  ;;  %v175_v28 = vpack.c.bf16 %v98_v24, %v98_v24  ;;  %v4915_v34 = vld [vmem:[#allocation5 + $0x2b0] sm:$0xff]   ;;  %v4960_v24 = vld [vmem:[#allocation5 + $0x388] sm:$0xff]  }
  0x44   :  { %v4957_v21 = vld [vmem:[#allocation5 + $0x2d0] sm:$0xff]  }
  0x45   :  { %4360 = vmatpush3.bf16.msra.mxu0 %v4874_v36  ;;  %v4917_v36 = vld [vmem:[#allocation5 + $0x228] sm:$0xff]  }
  0x46   :  { %4382 = vmatpush3.bf16.msra.mxu1 %v4875_v37  ;;  %4389 = vmatprep.subr.bf16.mxu0 %v4877_v41  ;;  %v4919_v37 = vld [vmem:[#allocation5 + $0x260] sm:$0xff]  }
  0x47   :  { %4411 = vmatprep.subr.bf16.mxu1 %v4878_v42  ;;  %v4921_v41 = vld [vmem:[#allocation5 + $0x2a0] sm:$0xff]   ;;  %v4923_v42 = vld [vmem:[#allocation5 + $0x218] sm:$0xff]  }
  0x48   :  { %924 = vmatmul.mubr.bf16.vlgmr.msra.gmra.mxu0 %v168_v45  ;;  %v57_v45 = vld [vmem:[#allocation2 + $0x10] sm:$0xff] }
  0x49   :  { %4390 = vmatpush3.bf16.msra.mxu0 %v4879_v48  ;;  %964 = vmatmul.mubr.bf16.vlgmr.msra.gmra.mxu1 %v170_v49  ;;  %v106_v47 = vrot.slane %v57_v45, %v5318_v35  ;;  %v4928_v48 = vld [vmem:[#allocation5 + $0x248] sm:$0xff]   ;;  %v4927_v49 = vld [vmem:[#allocation5 + $0x290] sm:$0xff]  }
  0x4a   :  { %4391 = vmatprep.subr.bf16.mxu0 %v4881_v50  ;;  %4412 = vmatpush3.bf16.msra.mxu1 %v4880_v52  ;;  %v99_v52 = vcombine.high %v57_v45, %v57_v45  ;;  %v4978_v45 = vld [vmem:[#allocation5 + $0x468] sm:$0xff]  }
  0x4b   :  { %4413 = vmatprep.subr.bf16.mxu1 %v4882_v53  ;;  %1003 = vmatprep.mubr.bf16.mxu0 %v173_v23  ;;  %v114_v50 = vcombine.high %v106_v47, %v106_v47  ;;  %v4959_v23 = vld [vmem:[#allocation5 + $0x308] sm:$0xff]  }
  0x4c   :  { %1043 = vmatprep.mubr.bf16.mxu1 %v175_v28  ;;  %v4964_v28 = vld [vmem:[#allocation5 + $0x380] sm:$0xff]  }
  0x4d   :  { %4392 = vmatpush3.bf16.msra.mxu0 %v4883_v54  ;;  %v177_v53 = vpack.c.bf16 %v114_v50, %v114_v50  ;;  %v4931_v54 = vld [vmem:[#allocation5 + $0x240] sm:$0xff]   ;;  %v4983_v50 = vld [vmem:[#allocation5 + $0x418] sm:$0xff]  }
  0x4e   :  { %4393 = vmatprep.subr.bf16.mxu0 %v4885_v55  ;;  %4414 = vmatpush3.bf16.msra.mxu1 %v4884_v56  ;;  %v4930_v55 = vld [vmem:[#allocation5 + $0x288] sm:$0xff]   ;;  %v4932_v56 = vld [vmem:[#allocation5 + $0x200] sm:$0xff]  }
  0x4f   :  { %4415 = vmatprep.subr.bf16.mxu1 %v4886_v57  ;;  %v4933_v57 = vld [vmem:[#allocation5 + $0x280] sm:$0xff]  }
  0x51   :  { %4394 = vmatpush3.bf16.msra.mxu0 %v4887_v58  ;;  %v113_v58 = vrot.slane %v99_v52, %v5318_v35  ;;  %v4985_v52 = vld [vmem:[#allocation5 + $0x3d8] sm:$0xff]  }
  0x52   :  { %4395 = vmatprep.subr.bf16.mxu0 %v4889_v59  ;;  %4416 = vmatpush3.bf16.msra.mxu1 %v4888_v60  ;;  %v4935_v59 = vld [vmem:[#allocation5 + $0x338] sm:$0xff]  }
  0x53   :  { %4417 = vmatprep.subr.bf16.mxu1 %v4890_v61  ;;  %v4936_v60 = vld [vmem:[#allocation5 + $0x3b8] sm:$0xff]   ;;  %v115_v61 = vcombine.high %v113_v58, %v113_v58 }
  0x55   :  { %4396 = vmatpush3.bf16.msra.mxu0 %v4891_v62  ;;  %v5336_v62 = vpack.c.bf16 %v106_v47, %v106_v47  ;;  %v4980_v47 = vld [vmem:[#allocation5 + $0x4a0] sm:$0xff]  }
  0x56   :  { %4397 = vmatprep.subr.bf16.mxu0 %v4893_v63  ;;  %4418 = vmatpush3.bf16.msra.mxu1 %v4892_v0  ;;  %v4937_v63 = vld [vmem:[#allocation5 + $0x2f8] sm:$0xff]  }
  0x57   :  { %4419 = vmatprep.subr.bf16.mxu1 %v4894_v1  ;;  %v4938_v0 = vld [vmem:[#allocation5 + $0x378] sm:$0xff]   ;;  %v5338_v1 = vpack.c.bf16 %v113_v58, %v113_v58  ;;  %v4991_v58 = vld [vmem:[#allocation5 + $0x408] sm:$0xff]  }
  0x59   :  { %4398 = vmatpush3.bf16.msra.mxu0 %v4895_v2  ;;  %v4939_v2 = vld [vmem:[#allocation5 + $0x330] sm:$0xff]  }
  0x5a   :  { %4399 = vmatprep.subr.bf16.mxu0 %v4897_v3  ;;  %4420 = vmatpush3.bf16.msra.mxu1 %v4896_v4  ;;  %v4940_v3 = vld [vmem:[#allocation5 + $0x3b0] sm:$0xff]   ;;  %v179_v4 = vpack.c.bf16 %v115_v61, %v115_v61 }
  0x5b   :  { %4421 = vmatprep.subr.bf16.mxu1 %v4898_v5  ;;  %v4941_v5 = vld [vmem:[#allocation5 + $0x2f0] sm:$0xff]  }
  0x5c   :  { %v4990_v61 = vld [vmem:[#allocation5 + $0x450] sm:$0xff]  }
  0x5d   :  { %4400 = vmatpush3.bf16.msra.mxu0 %v4899_v6  ;;  %v4942_v6 = vld [vmem:[#allocation5 + $0x370] sm:$0xff]  }
  0x5e   :  { %4401 = vmatprep.subr.bf16.mxu0 %v4901_v7  ;;  %4422 = vmatpush3.bf16.msra.mxu1 %v4900_v8  ;;  %v4943_v7 = vld [vmem:[#allocation5 + $0x328] sm:$0xff]  }
  0x5f   :  { %4423 = vmatprep.subr.bf16.mxu1 %v4902_v9  ;;  %v4944_v8 = vld [vmem:[#allocation5 + $0x3a8] sm:$0xff]  }
  0x60   :  { %v4945_v9 = vld [vmem:[#allocation5 + $0x2e8] sm:$0xff]  }
  0x61   :  { %4402 = vmatpush3.bf16.msra.mxu0 %v4903_v10  ;;  %v4946_v10 = vld [vmem:[#allocation5 + $0x368] sm:$0xff]  }
  0x62   :  { %4403 = vmatprep.subr.bf16.mxu0 %v4905_v11  ;;  %4424 = vmatpush3.bf16.msra.mxu1 %v4904_v12  ;;  %v4947_v11 = vld [vmem:[#allocation5 + $0x320] sm:$0xff]  }
  0x63   :  { %4425 = vmatprep.subr.bf16.mxu1 %v4906_v13  ;;  %v4948_v12 = vld [vmem:[#allocation5 + $0x3a0] sm:$0xff]  }
  0x64   :  { %v4949_v13 = vld [vmem:[#allocation5 + $0x2e0] sm:$0xff]  }
  0x65   :  { %4404 = vmatpush3.bf16.msra.mxu0 %v4907_v15  ;;  %v4951_v15 = vld [vmem:[#allocation5 + $0x318] sm:$0xff]  }
  0x66   :  { %4433 = vmatprep.subr.bf16.mxu0 %v4910_v18  ;;  %4426 = vmatpush3.bf16.msra.mxu1 %v4908_v19  ;;  %v4954_v18 = vld [vmem:[#allocation5 + $0x358] sm:$0xff]   ;;  %v4955_v19 = vld [vmem:[#allocation5 + $0x310] sm:$0xff]  }
  0x67   :  { %4676 = vmatprep.subr.bf16.mxu1 %v5282_v31 }
  0x68   :  { %1004 = vmatmul.mubr.bf16.vlgmr.msra.gmra.mxu0 %v172_v22  ;;  %v4958_v22 = vld [vmem:[#allocation5 + $0x350] sm:$0xff]  }
  0x69   :  { %4434 = vmatpush3.bf16.msra.mxu0 %v4911_v25  ;;  %1044 = vmatmul.mubr.bf16.vlgmr.msra.gmra.mxu1 %v174_v26  ;;  %v4961_v25 = vld [vmem:[#allocation5 + $0x2c8] sm:$0xff]  }
  0x6a   :  { %4435 = vmatprep.subr.bf16.mxu0 %v4913_v27  ;;  %4677 = vmatpush3.bf16.msra.mxu1 %v4912_v29  ;;  %v4962_v26 = vld [vmem:[#allocation5 + $0x348] sm:$0xff]   ;;  %v4963_v27 = vld [vmem:[#allocation5 + $0x300] sm:$0xff]  }
  0x6b   :  { %4692 = vmatprep.mubr.msk.bf16.mxu1 %vm5283_vm0, %v5282_v31  ;;  %4678 = vmatprep.subr.bf16.mxu1 %v5282_v31  ;;  %v4965_v29 = vld [vmem:[#allocation5 + $0x2c0] sm:$0xff]  }
  0x6c   :  { %1083 = vmatprep.mubr.bf16.mxu0 %v177_v53 }
  0x6d   :  { %4436 = vmatpush3.bf16.msra.mxu0 %v4914_v32  ;;  %v4966_v32 = vld [vmem:[#allocation5 + $0x340] sm:$0xff]  }
  0x6e   :  { %4437 = vmatprep.subr.bf16.mxu0 %v4916_v33  ;;  %4679 = vmatpush3.bf16.msra.mxu1 %v4915_v34  ;;  %v4967_v33 = vld [vmem:[#allocation5 + $0x438] sm:$0xff]  }
  0x6f   :  { %4680 = vmatprep.subr.bf16.mxu1 %v5282_v31  ;;  %v4968_v34 = vld [vmem:[#allocation5 + $0x4b8] sm:$0xff]  }
  0x71   :  { %4438 = vmatpush3.bf16.msra.mxu0 %v4917_v36  ;;  %v4969_v36 = vld [vmem:[#allocation5 + $0x3f8] sm:$0xff]  }
  0x72   :  { %4439 = vmatprep.subr.bf16.mxu0 %v4919_v37  ;;  %4681 = vmatpush3.bf16.msra.mxu1 %v4918_v38  ;;  %v4970_v37 = vld [vmem:[#allocation5 + $0x478] sm:$0xff]   ;;  %v4971_v38 = vld [vmem:[#allocation5 + $0x430] sm:$0xff]  }
  0x73   :  { %4682 = vmatprep.subr.bf16.mxu1 %v5282_v31 }
  0x75   :  { %4440 = vmatpush3.bf16.msra.mxu0 %v4920_v39  ;;  %v4972_v39 = vld [vmem:[#allocation5 + $0x4b0] sm:$0xff]  }
  0x76   :  { %4441 = vmatprep.subr.bf16.mxu0 %v4922_v40  ;;  %4683 = vmatpush3.bf16.msra.mxu1 %v4921_v41  ;;  %v4973_v40 = vld [vmem:[#allocation5 + $0x3f0] sm:$0xff]  }
  0x77   :  { %4684 = vmatprep.subr.bf16.mxu1 %v5282_v31  ;;  %v4974_v41 = vld [vmem:[#allocation5 + $0x470] sm:$0xff]  }
  0x79   :  { %4442 = vmatpush3.bf16.msra.mxu0 %v4923_v42  ;;  %v4975_v42 = vld [vmem:[#allocation5 + $0x428] sm:$0xff]  }
  0x7a   :  { %4443 = vmatprep.subr.bf16.mxu0 %v4925_v43  ;;  %4685 = vmatpush3.bf16.msra.mxu1 %v4924_v44  ;;  %v4976_v43 = vld [vmem:[#allocation5 + $0x4a8] sm:$0xff]  }
  0x7b   :  { %4686 = vmatprep.subr.bf16.mxu1 %v5282_v31  ;;  %v4977_v44 = vld [vmem:[#allocation5 + $0x3e8] sm:$0xff]  }
  0x7d   :  { %4444 = vmatpush3.bf16.msra.mxu0 %v4926_v46  ;;  %v4979_v46 = vld [vmem:[#allocation5 + $0x420] sm:$0xff]  }
  0x7e   :  { %4445 = vmatprep.subr.bf16.mxu0 %v4928_v48  ;;  %4687 = vmatpush3.bf16.msra.mxu1 %v4927_v49  ;;  %v4981_v48 = vld [vmem:[#allocation5 + $0x3e0] sm:$0xff]  }
  0x7f   :  { %4688 = vmatprep.subr.bf16.mxu1 %v5282_v31  ;;  %v4982_v49 = vld [vmem:[#allocation5 + $0x460] sm:$0xff]  }
  0x81   :  { %4446 = vmatpush3.bf16.msra.mxu0 %v4929_v51  ;;  %v4984_v51 = vld [vmem:[#allocation5 + $0x498] sm:$0xff]  }
  0x82   :  { %4447 = vmatprep.subr.bf16.mxu0 %v4931_v54  ;;  %4689 = vmatpush3.bf16.msra.mxu1 %v4930_v55  ;;  %v4987_v54 = vld [vmem:[#allocation5 + $0x410] sm:$0xff]  }
  0x83   :  { %4690 = vmatprep.subr.bf16.mxu1 %v5282_v31  ;;  %v4988_v55 = vld [vmem:[#allocation5 + $0x490] sm:$0xff]  }
  0x85   :  { %4448 = vmatpush3.bf16.msra.mxu0 %v4932_v56  ;;  %v4989_v56 = vld [vmem:[#allocation5 + $0x3d0] sm:$0xff]  }
  0x86   :  { %4464 = vmatprep.subr.bf16.mxu0 %v4935_v59  ;;  %4691 = vmatpush3.bf16.msra.mxu1 %v4933_v57  ;;  %v58_v57 = vld [vmem:[#allocation2 + $0x18] sm:$0xff] }
  0x87   :  { %4486 = vmatprep.subr.bf16.mxu1 %v4936_v60  ;;  %v123_v59 = vrot.slane %v58_v57, %v5318_v35  ;;  %v116_v60 = vcombine.high %v58_v57, %v58_v57  ;;  %v5025_v57 = vld [vmem:[#allocation7 + $0x1ec] ss:$16 sps:$4 sm:$0xff]  }
  0x88   :  { %1084 = vmatmul.mubr.bf16.vlgmr.msra.gmra.mxu0 %v5336_v62 }
  0x89   :  { %4465 = vmatpush3.bf16.msra.mxu0 %v4937_v63  ;;  %1867 = vmatprep.mubr.bf16.mxu0 %v177_v53  ;;  %v4986_v53 = vld [vmem:[#allocation5 + $0x458] sm:$0xff]   ;;  %v131_v63 = vcombine.high %v123_v59, %v123_v59 }
  0x8a   :  { %4693 = vmatmul.mubr.bf16.vlgmr.msra.gmra.mxu1 %v5338_v1  ;;  %4466 = vmatprep.subr.bf16.mxu0 %v4939_v2  ;;  %v4995_v2 = vld [vmem:[#allocation5 + $0x400] sm:$0xff]  }
  0x8b   :  { %4487 = vmatpush3.bf16.msra.mxu1 %v4938_v0  ;;  %1907 = vmatprep.mubr.bf16.mxu1 %v179_v4  ;;  %v130_v0 = vrot.slane %v116_v60, %v5318_v35  ;;  %v5028_v60 = vld [vmem:[#allocation7 + $0xcc] ss:$16 sps:$4 sm:$0xff]  }
  0x8c   :  { %4488 = vmatprep.subr.bf16.mxu1 %v4940_v3  ;;  %v181_v3 = vpack.c.bf16 %v131_v63, %v131_v63  ;;  %v5030_v63 = vld [vmem:[#allocation7 + $0xac] ss:$16 sps:$4 sm:$0xff]  }
  0x8d   :  { %4467 = vmatpush3.bf16.msra.mxu0 %v4941_v5  ;;  %v132_v4 = vcombine.high %v130_v0, %v130_v0  ;;  %v4994_v5 = vld [vmem:[#allocation5 + $0x448] sm:$0xff]  }
  0x8e   :  { %4468 = vmatprep.subr.bf16.mxu0 %v4943_v7 }
  0x8f   :  { %4489 = vmatpush3.bf16.msra.mxu1 %v4942_v6  ;;  %v4996_v6 = vld [vmem:[#allocation5 + $0x480] sm:$0xff]   ;;  %v183_v7 = vpack.c.bf16 %v132_v4, %v132_v4 }
  0x90   :  { %4490 = vmatprep.subr.bf16.mxu1 %v4944_v8  ;;  %v4997_v8 = vld [vmem:[#allocation5 + $0x3c0] sm:$0xff]  }
  0x91   :  { %4469 = vmatpush3.bf16.msra.mxu0 %v4945_v9  ;;  %v5000_v9 = vld [vmem:[#allocation5 + $0x538] sm:$0xff]  }
  0x92   :  { %4470 = vmatprep.subr.bf16.mxu0 %v4947_v11  ;;  %v180_v11 = vpack.c.bf16 %v123_v59, %v123_v59  ;;  %v5027_v59 = vld [vmem:[#allocation7 + $0x1cc] ss:$16 sps:$4 sm:$0xff]  }
  0x93   :  { %4491 = vmatpush3.bf16.msra.mxu1 %v4946_v10  ;;  %v4998_v10 = vld [vmem:[#allocation5 + $0x440] sm:$0xff]  }
  0x94   :  { %4492 = vmatprep.subr.bf16.mxu1 %v4948_v12  ;;  %v5001_v12 = vld [vmem:[#allocation5 + $0x4f8] sm:$0xff]  }
  0x95   :  { %4471 = vmatpush3.bf16.msra.mxu0 %v4949_v13  ;;  %v182_v13 = vpack.c.bf16 %v130_v0, %v130_v0 }
  0x96   :  { %4472 = vmatprep.subr.bf16.mxu0 %v4951_v15  ;;  %v5002_v15 = vld [vmem:[#allocation5 + $0x578] sm:$0xff]  }
  0x97   :  { %4493 = vmatpush3.bf16.msra.mxu1 %v4950_v14  ;;  %v5003_v14 = vld [vmem:[#allocation5 + $0x530] sm:$0xff]  }
  0x98   :  { %4494 = vmatprep.subr.bf16.mxu1 %v4952_v16  ;;  %v5004_v16 = vld [vmem:[#allocation5 + $0x4f0] sm:$0xff]  }
  0x99   :  { %4473 = vmatpush3.bf16.msra.mxu0 %v4953_v17  ;;  %v5006_v17 = vld [vmem:[#allocation5 + $0x528] sm:$0xff]  }
  0x9a   :  { %4474 = vmatprep.subr.bf16.mxu0 %v4955_v19  ;;  %v5007_v19 = vld [vmem:[#allocation5 + $0x4e8] sm:$0xff]  }
  0x9b   :  { %4495 = vmatpush3.bf16.msra.mxu1 %v4954_v18  ;;  %v5005_v18 = vld [vmem:[#allocation5 + $0x570] sm:$0xff]  }
  0x9c   :  { %4496 = vmatprep.subr.bf16.mxu1 %v4956_v20  ;;  %v5009_v20 = vld [vmem:[#allocation5 + $0x520] sm:$0xff]  }
  0x9d   :  { %4475 = vmatpush3.bf16.msra.mxu0 %v4957_v21  ;;  %v5008_v21 = vld [vmem:[#allocation5 + $0x568] sm:$0xff]  }
  0x9e   :  { %4476 = vmatprep.subr.bf16.mxu0 %v4959_v23  ;;  %v5011_v23 = vld [vmem:[#allocation5 + $0x560] sm:$0xff]  }
  0x9f   :  { %4497 = vmatpush3.bf16.msra.mxu1 %v4958_v22  ;;  %v5010_v22 = vld [vmem:[#allocation5 + $0x4e0] sm:$0xff]  }
  0xa0   :  { %4498 = vmatprep.subr.bf16.mxu1 %v4960_v24  ;;  %v5012_v24 = vld [vmem:[#allocation5 + $0x518] sm:$0xff]  }
  0xa1   :  { %4477 = vmatpush3.bf16.msra.mxu0 %v4961_v25  ;;  %v59_v25 = vld [vmem:[#allocation2 + $0x20] sm:$0x3f] }
  0xa2   :  { %4478 = vmatprep.subr.bf16.mxu0 %v4963_v27  ;;  %v5013_v27 = vld [vmem:[#allocation5 + $0x4d8] sm:$0xff]  }
  0xa3   :  { %4499 = vmatpush3.bf16.msra.mxu1 %v4962_v26  ;;  %v140_v26 = vrot.slane %v59_v25, %v5318_v35 }
  0xa4   :  { %4500 = vmatprep.subr.bf16.mxu1 %v4964_v28  ;;  %v5015_v28 = vld [vmem:[#allocation5 + $0x510] sm:$0xff]  }
  0xa5   :  { %4479 = vmatpush3.bf16.msra.mxu0 %v4965_v29  ;;  %v148_v29 = vcombine.high %v140_v26, %v140_v26 }
  0xa6   :  { %4508 = vmatprep.subr.bf16.mxu0 %v4967_v33 }
  0xa7   :  { %4501 = vmatpush3.bf16.msra.mxu1 %v4966_v32  ;;  %v5014_v32 = vld [vmem:[#allocation5 + $0x558] sm:$0xff]   ;;  %v185_v33 = vpack.c.bf16 %v148_v29, %v148_v29 }
  0xa8   :  { %1868 = vmatmul.mubr.bf16.vlgmr.msra.gmra.mxu0 %v5336_v62  ;;  %4530 = vmatprep.subr.bf16.mxu1 %v4968_v34  ;;  %v4992_v62 = vld [vmem:[#allocation5 + $0x488] sm:$0xff]   ;;  %v5016_v34 = vld [vmem:[#allocation5 + $0x4d0] sm:$0xff]  }
  0xa9   :  { %4509 = vmatpush3.bf16.msra.mxu0 %v4969_v36  ;;  %1947 = vmatprep.mubr.bf16.mxu0 %v181_v3  ;;  %v5018_v36 = vld [vmem:[#allocation5 + $0x508] sm:$0xff]  }
  0xaa   :  { %1908 = vmatmul.mubr.bf16.vlgmr.msra.gmra.mxu1 %v5338_v1  ;;  %4510 = vmatprep.subr.bf16.mxu0 %v4971_v38  ;;  %v4993_v1 = vld [vmem:[#allocation5 + $0x3c8] sm:$0xff]  }
  0xab   :  { %4531 = vmatpush3.bf16.msra.mxu1 %v4970_v37  ;;  %1987 = vmatprep.mubr.bf16.mxu1 %v183_v7  ;;  %v5017_v37 = vld [vmem:[#allocation5 + $0x550] sm:$0xff]   ;;  %v5019_v38 = vld [vmem:[#allocation5 + $0x4c8] sm:$0xff]  }
  0xac   :  { %4532 = vmatprep.subr.bf16.mxu1 %v4972_v39  ;;  %v5021_v39 = vld [vmem:[#allocation5 + $0x500] sm:$0xff]   ;;  %v5031_v3 = vld [vmem:[#allocation7 + $0x18c] ss:$16 sps:$4 sm:$0xff]  }
  0xad   :  { %4511 = vmatpush3.bf16.msra.mxu0 %v4973_v40  ;;  %v5020_v40 = vld [vmem:[#allocation5 + $0x548] sm:$0xff]  }
  0xae   :  { %4512 = vmatprep.subr.bf16.mxu0 %v4975_v42  ;;  %v5022_v42 = vld [vmem:[#allocation5 + $0x4c0] sm:$0xff]  }
  0xaf   :  { %4533 = vmatpush3.bf16.msra.mxu1 %v4974_v41  ;;  %v133_v41 = vcombine.high %v59_v25, %v59_v25 }
  0xb0   :  { %4534 = vmatprep.subr.bf16.mxu1 %v4976_v43  ;;  %v5023_v43 = vld [vmem:[#allocation5 + $0x540] sm:$0xff]  }
  0xb1   :  { %4513 = vmatpush3.bf16.msra.mxu0 %v4977_v44  ;;  %v147_v44 = vrot.slane %v133_v41, %v5318_v35 }
  0xb2   :  { %4514 = vmatprep.subr.bf16.mxu0 %v4979_v46 }
  0xb3   :  { %4535 = vmatpush3.bf16.msra.mxu1 %v4978_v45  ;;  %v184_v45 = vpack.c.bf16 %v140_v26, %v140_v26  ;;  %v186_v46 = vpack.c.bf16 %v147_v44, %v147_v44 }
  0xb4   :  { %4536 = vmatprep.subr.bf16.mxu1 %v4980_v47 }
  0xb5   :  { %4515 = vmatpush3.bf16.msra.mxu0 %v4981_v48 }
  0xb6   :  { %4516 = vmatprep.subr.bf16.mxu0 %v4983_v50 }
  0xb7   :  { %4537 = vmatpush3.bf16.msra.mxu1 %v4982_v49 }
  0xb8   :  { %4538 = vmatprep.subr.bf16.mxu1 %v4984_v51 }
  0xb9   :  { %4517 = vmatpush3.bf16.msra.mxu0 %v4985_v52 }
  0xba   :  { %4518 = vmatprep.subr.bf16.mxu0 %v4987_v54 }
  0xbb   :  { %4539 = vmatpush3.bf16.msra.mxu1 %v4986_v53 }
  0xbc   :  { %4540 = vmatprep.subr.bf16.mxu1 %v4988_v55 }
  0xbd   :  { %4519 = vmatpush3.bf16.msra.mxu0 %v4989_v56 }
  0xbe   :  { %4520 = vmatprep.subr.bf16.mxu0 %v4991_v58  ;;  %v5026_v58 = vld [vmem:[#allocation7 + $0xec] ss:$16 sps:$4 sm:$0xff]  }
  0xbf   :  { %4541 = vmatpush3.bf16.msra.mxu1 %v4990_v61  ;;  %v5029_v61 = vld [vmem:[#allocation7 + $0x1ac] ss:$16 sps:$4 sm:$0xff]  }
  0xc0   :  { %4542 = vmatprep.subr.bf16.mxu1 %v4992_v62 }
  0xc1   :  { %4521 = vmatpush3.bf16.msra.mxu0 %v4993_v1 }
  0xc2   :  { %4522 = vmatprep.subr.bf16.mxu0 %v4995_v2 }
  0xc3   :  { %4543 = vmatpush3.bf16.msra.mxu1 %v4994_v5 }
  0xc4   :  { %4544 = vmatprep.subr.bf16.mxu1 %v4996_v6  ;;  %v5032_v6 = vld [vmem:[#allocation7 + $0x8c] ss:$16 sps:$4 sm:$0xff]  }
  0xc5   :  { %4523 = vmatpush3.bf16.msra.mxu0 %v4997_v8 }
  0xc6   :  { %4552 = vmatprep.subr.bf16.mxu0 %v5000_v9 }
  0xc7   :  { %4545 = vmatpush3.bf16.msra.mxu1 %v4998_v10 }
  0xc8   :  { %1948 = vmatmul.mubr.bf16.vlgmr.msra.gmra.mxu0 %v180_v11  ;;  %4696 = vmatprep.subr.bf16.mxu1 %v5282_v31 }
  0xc9   :  { %4553 = vmatpush3.bf16.msra.mxu0 %v5001_v12  ;;  %2027 = vmatprep.mubr.bf16.mxu0 %v185_v33  ;;  %v5033_v12 = vld [vmem:[#allocation7 + $0x16c] ss:$16 sps:$4 sm:$0xff]  }
  0xca   :  { %1988 = vmatmul.mubr.bf16.vlgmr.msra.gmra.mxu1 %v182_v13  ;;  %4554 = vmatprep.subr.bf16.mxu0 %v5003_v14  ;;  %v5034_v14 = vld [vmem:[#allocation7 + $0x6c] ss:$16 sps:$4 sm:$0xff]  }
  0xcb   :  { %4697 = vmatpush3.bf16.msra.mxu1 %v5002_v15  ;;  %4712 = vmatprep.mubr.msk.bf16.mxu1 %vm5283_vm0, %v5282_v31  ;;  %v5035_v15 = vld [vmem:[#allocation7 + $0x14c] ss:$16 sps:$4 sm:$0xff]  }
  0xcc   :  { %4698 = vmatprep.subr.bf16.mxu1 %v5282_v31 }
  0xcd   :  { %4555 = vmatpush3.bf16.msra.mxu0 %v5004_v16  ;;  %v5036_v16 = vld [vmem:[#allocation7 + $0x4c] ss:$16 sps:$4 sm:$0xff]  }
  0xce   :  { %4556 = vmatprep.subr.bf16.mxu0 %v5006_v17  ;;  %v5037_v17 = vld [vmem:[#allocation7 + $0x12c] ss:$16 sps:$4 sm:$0xff]  }
  0xcf   :  { %4699 = vmatpush3.bf16.msra.mxu1 %v5005_v18  ;;  %v5038_v18 = vld [vmem:[#allocation7 + $0x2c] ss:$16 sps:$4 sm:$0xff]  }
  0xd0   :  { %4700 = vmatprep.subr.bf16.mxu1 %v5282_v31 }
  0xd1   :  { %4557 = vmatpush3.bf16.msra.mxu0 %v5007_v19  ;;  %v5039_v19 = vld [vmem:[#allocation7 + $0x10c] ss:$16 sps:$4 sm:$0xff]  }
  0xd2   :  { %4558 = vmatprep.subr.bf16.mxu0 %v5009_v20  ;;  %v5040_v20 = vld [vmem:[#allocation7 + $0xc] ss:$16 sps:$4 sm:$0xff]  }
  0xd3   :  { %4701 = vmatpush3.bf16.msra.mxu1 %v5008_v21 }
  0xd4   :  { %4702 = vmatprep.subr.bf16.mxu1 %v5282_v31 }
  0xd5   :  { %4559 = vmatpush3.bf16.msra.mxu0 %v5010_v22 }
  0xd6   :  { %4560 = vmatprep.subr.bf16.mxu0 %v5012_v24 }
  0xd7   :  { %4703 = vmatpush3.bf16.msra.mxu1 %v5011_v23 }
  0xd8   :  { %4704 = vmatprep.subr.bf16.mxu1 %v5282_v31 }
  0xd9   :  { %4561 = vmatpush3.bf16.msra.mxu0 %v5013_v27 }
  0xda   :  { %4562 = vmatprep.subr.bf16.mxu0 %v5015_v28 }
  0xdb   :  { %4705 = vmatpush3.bf16.msra.mxu1 %v5014_v32 }
  0xdc   :  { %4706 = vmatprep.subr.bf16.mxu1 %v5282_v31 }
  0xdd   :  { %4563 = vmatpush3.bf16.msra.mxu0 %v5016_v34 }
  0xde   :  { %4564 = vmatprep.subr.bf16.mxu0 %v5018_v36 }
  0xdf   :  { %4707 = vmatpush3.bf16.msra.mxu1 %v5017_v37 }
  0xe0   :  { %4708 = vmatprep.subr.bf16.mxu1 %v5282_v31 }
  0xe1   :  { %4565 = vmatpush3.bf16.msra.mxu0 %v5019_v38 }
  0xe2   :  { %4566 = vmatprep.subr.bf16.mxu0 %v5021_v39 }
  0xe3   :  { %4709 = vmatpush3.bf16.msra.mxu1 %v5020_v40 }
  0xe4   :  { %4710 = vmatprep.subr.bf16.mxu1 %v5282_v31 }
  0xe5   :  { %4567 = vmatpush3.bf16.msra.mxu0 %v5022_v42 }
  0xe6   :  { %4583 = vmatprep.subr.bf16.mxu0 %v5025_v57 }
  0xe7   :  { %4711 = vmatpush3.bf16.msra.mxu1 %v5023_v43 }
  0xe8   :  { %2028 = vmatmul.mubr.bf16.vlgmr.msra.gmra.mxu0 %v184_v45 }
  0xe9   :  { %4584 = vmatpush3.bf16.msra.mxu0 %v5026_v58 }
  0xea   :  { %4713 = vmatmul.mubr.bf16.vlgmr.msra.gmra.mxu1 %v186_v46  ;;  %4585 = vmatprep.subr.bf16.mxu0 %v5027_v59 }
  0xed   :  { %4586 = vmatpush3.bf16.msra.mxu0 %v5028_v60 }
  0xee   :  { %4587 = vmatprep.subr.bf16.mxu0 %v5029_v61 }
  0xf1   :  { %4588 = vmatpush3.bf16.msra.mxu0 %v5030_v63 }
  0xf2   :  { %4589 = vmatprep.subr.bf16.mxu0 %v5031_v3 }
  0xf5   :  { %4590 = vmatpush3.bf16.msra.mxu0 %v5032_v6 }
  0xf6   :  { %4591 = vmatprep.subr.bf16.mxu0 %v5033_v12 }
  0xf9   :  { %4592 = vmatpush3.bf16.msra.mxu0 %v5034_v14 }
  0xfa   :  { %4593 = vmatprep.subr.bf16.mxu0 %v5035_v15 }
  0xfd   :  { %4594 = vmatpush3.bf16.msra.mxu0 %v5036_v16 }
  0xfe   :  { %4595 = vmatprep.subr.bf16.mxu0 %v5037_v17 }
 0x101   :  { %4596 = vmatpush3.bf16.msra.mxu0 %v5038_v18 }
 0x102   :  { %4597 = vmatprep.subr.bf16.mxu0 %v5039_v19 }
 0x105   :  { %4598 = vmatpush3.bf16.msra.mxu0 %v5040_v20 }
 0x108   :  { %v4361_v47 = vpop.f32.mrf.mxu0 }
 0x109   :  { %v4383_v48 = vpop.f32.mrf.mxu1 }
 0x10a   :  { %v4362_v49 = vpop.f32.mrf.mxu0 }
 0x10b   :  { %v4363_v50 = vadd.f32 %v4362_v49, %v4361_v47  ;;  %v4384_v51 = vpop.f32.mrf.mxu1 }
 0x10c   :  { %v4364_v52 = vpop.f32.mrf.mxu0  ;;  %v4385_v53 = vadd.f32 %v4384_v51, %v4383_v48 }
 0x10d   :  { %v4386_v54 = vpop.f32.mrf.mxu1 }
 0x10e   :  { %v4365_v55 = vpop.f32.mrf.mxu0  ;;  %v966_v56 = vadd.f32 %v4385_v53, %v4363_v50 }
 0x10f   :  { %v4387_v35 = vpop.f32.mrf.mxu1 }
 0x128   :  { %v4405_v62 = vpop.f32.mrf.mxu0 }
 0x129   :  { %v4427_v0 = vpop.f32.mrf.mxu1 }
 0x12a   :  { %v4406_v1 = vpop.f32.mrf.mxu0 }
 0x12b   :  { %v4407_v2 = vadd.f32 %v4406_v1, %v4405_v62  ;;  %v4428_v4 = vpop.f32.mrf.mxu1 }
 0x12c   :  { %v4408_v5 = vpop.f32.mrf.mxu0  ;;  %v4429_v8 = vadd.f32 %v4428_v4, %v4427_v0 }
 0x12d   :  { %v1006_v7 = vadd.f32 %v4407_v2, %v966_v56  ;;  %v4430_v9 = vpop.f32.mrf.mxu1 }
 0x12e   :  { %v4409_v10 = vpop.f32.mrf.mxu0 }
 0x12f   :  { %v1046_v11 = vadd.f32 %v4429_v8, %v1006_v7  ;;  %v4431_v13 = vpop.f32.mrf.mxu1 }
 0x148   :  { %v4449_v21 = vpop.f32.mrf.mxu0 }
 0x14a   :  { %v1125_v22 = vpop.f32.mrf.mxu1  ;;  %v4450_v23 = vpop.f32.mrf.mxu0 }
 0x14b   :  { %v4451_v24 = vadd.f32 %v4450_v23, %v4449_v21 }
 0x14c   :  { %v4694_v25 = vpop.f32.mrf.mxu1  ;;  %v4452_v26 = vpop.f32.mrf.mxu0 }
 0x14d   :  { %v1086_v27 = vadd.f32 %v4451_v24, %v1046_v11 }
 0x14e   :  { %v1128_v28 = vpop.f32.mrf.mxu1  ;;  %v4453_v29 = vpop.f32.mrf.mxu0 }
 0x14f   :  { %v5358_v32 = vadd.f32 %v1125_v22, %v1086_v27 }
 0x150   :  { %v4695_v33 = vpop.f32.mrf.mxu1 }
 0x151   :  { %v2077_v54 = vpack.c.bf16 %v5358_v32, %v5358_v32  ;;  %v2075_v56 = vmul.f32 %v5358_v32, %v5358_v32 }
 0x153   :  { %v2079_v58 = vunpack.c.l.bf16 %v2077_v54  ;;  %v2085_v62 = vpack.c.bf16 %v2075_v56, %v2075_v56 }
 0x155   :  { %v2081_v1 = vsub.f32 %v5358_v32, %v2079_v58  ;;  %v2087_v7 = vunpack.c.l.bf16 %v2085_v62  ;;  %v2099_v25 = vrot.slane %v2085_v62, 6 }
 0x157   :  { %v2083_v10 = vpack.c.bf16 %v2081_v1, %v2081_v1  ;;  %v2089_v13 = vsub.f32 %v2075_v56, %v2087_v7 }
 0x159   :  { %v2095_v16 = vrot.slane %v2083_v10, 7  ;;  %v2091_v19 = vpack.c.bf16 %v2089_v13, %v2089_v13 }
 0x15b   :  { %v2108_v22 = vsel %vm2105_vm1, %v2077_v54, %v2095_v16  ;;  %v2103_v27 = vrot.slane %v2091_v19, 5  ;;  %v2324_v16 = vld [vmem:[#allocation7 + $0x420] sm:$0x2] }
 0x15c   :  { %v2114_v33 = vsel %vm2112_vm2, %v2108_v22, %v2099_v25 }
 0x168   :  { %v4480_v34 = vpop.f32.mrf.mxu0 }
 0x16a   :  { %v4502_v36 = vpop.f32.mrf.mxu1  ;;  %v4481_v37 = vpop.f32.mrf.mxu0 }
 0x16b   :  { %v4482_v51 = vadd.f32 %v4481_v37, %v4480_v34  ;;  %v2119_v37 = vsel %vm2117_vm3, %v2114_v33, %v2103_v27 }
 0x16c   :  { %v4503_v38 = vpop.f32.mrf.mxu1  ;;  %v4483_v39 = vpop.f32.mrf.mxu0 }
 0x16d   :  { %v4504_v52 = vadd.f32 %v4503_v38, %v4502_v36  ;;  %v2364_v38 = vld [vmem:[#allocation7 + $0x380] sm:$0x33] }
 0x16e   :  { %v4505_v40 = vpop.f32.mrf.mxu1  ;;  %v4484_v41 = vpop.f32.mrf.mxu0  ;;  %v4224_v39 = vcombine.high %v2364_v38, %v2364_v38 }
 0x16f   :  { %v1910_v55 = vadd.f32 %v4504_v52, %v4482_v51  ;;  %v4223_v40 = vcombine.low %v2364_v38, %v2364_v38  ;;  %v5284_v41 = vmov 0   ;;  %v5086_v51 = vld [vmem:[#allocation7 + $0x88] ss:$16 sps:$4 sm:$0xff]   ;;  %v5174_v38 = vld [vmem:[#allocation7 + $0x324] ss:$16 sps:$4 sm:$0xff]  }
 0x170   :  { %v4506_v42 = vpop.f32.mrf.mxu1  ;;  %2412 = vmatprep.mubr.bf16.mxu1 %v5284_v41  ;;  %4225 = vmatprep.subr.msk.bf16.mxu1 %vm2112_vm2, %v4224_v39 }
 0x171   :  { %v2375_v42 = vsel %vm2112_vm2, %v4223_v40, 0 }
 0x172   :  { %2395 = vmatpush1.bf16.msra.mxu1 %v2375_v42 }
 0x188   :  { %v4524_v43 = vpop.f32.mrf.mxu0 }
 0x18a   :  { %v4546_v44 = vpop.f32.mrf.mxu1  ;;  %v4525_v45 = vpop.f32.mrf.mxu0 }
 0x18b   :  { %v4526_v53 = vadd.f32 %v4525_v45, %v4524_v43  ;;  %v5045_v43 = vld [vmem:[#allocation7 + $0xe4] ss:$16 sps:$4 sm:$0xff]   ;;  %v5071_v45 = vld [vmem:[#allocation7 + $0xe8] ss:$16 sps:$4 sm:$0xff]  }
 0x18c   :  { %v4547_v46 = vpop.f32.mrf.mxu1  ;;  %v4527_v47 = vpop.f32.mrf.mxu0  ;;  %2773 = vmatprep.subr.bf16.mxu1 %v5045_v43  ;;  %v5175_v43 = vld [vmem:[#allocation7 + $0x328] ss:$16 sps:$4 sm:$0xff]  }
 0x18d   :  { %v1950_v35 = vadd.f32 %v4526_v53, %v1910_v55  ;;  %v4548_v57 = vadd.f32 %v4547_v46, %v4546_v44  ;;  %v5070_v44 = vld [vmem:[#allocation7 + $0x1e8] ss:$16 sps:$4 sm:$0xff]  }
 0x18e   :  { %v4549_v48 = vpop.f32.mrf.mxu1  ;;  %v4528_v49 = vpop.f32.mrf.mxu0  ;;  %4605 = vmatprep.subr.bf16.mxu0 %v5070_v44  ;;  %v5075_v46 = vld [vmem:[#allocation7 + $0x1c8] ss:$16 sps:$4 sm:$0xff]  }
 0x18f   :  { %v1990_v63 = vadd.f32 %v4548_v57, %v1950_v35  ;;  %v5076_v47 = vld [vmem:[#allocation7 + $0xc8] ss:$16 sps:$4 sm:$0xff]  }
 0x190   :  { %v4550_v50 = vpop.f32.mrf.mxu1  ;;  %v5080_v48 = vld [vmem:[#allocation7 + $0x1a8] ss:$16 sps:$4 sm:$0xff]  }
 0x191   :  { %v5081_v49 = vld [vmem:[#allocation7 + $0xa8] ss:$16 sps:$4 sm:$0xff]  }
 0x192   :  { %v5085_v50 = vld [vmem:[#allocation7 + $0x188] ss:$16 sps:$4 sm:$0xff]  }
 0x1a8   :  { %v4568_v59 = vpop.f32.mrf.mxu0 }
 0x1aa   :  { %v2069_v60 = vpop.f32.mrf.mxu1  ;;  %v4569_v61 = vpop.f32.mrf.mxu0 }
 0x1ab   :  { %v4570_v0 = vadd.f32 %v4569_v61, %v4568_v59 }
 0x1ac   :  { %v4714_v2 = vpop.f32.mrf.mxu1  ;;  %v4571_v3 = vpop.f32.mrf.mxu0 }
 0x1ad   :  { %v2030_v4 = vadd.f32 %v4570_v0, %v1990_v63 }
 0x1ae   :  { %v2072_v5 = vpop.f32.mrf.mxu1  ;;  %v4572_v6 = vpop.f32.mrf.mxu0 }
 0x1af   :  { %v5365_v8 = vadd.f32 %v2069_v60, %v2030_v4 }
 0x1b0   :  { %v4715_v9 = vpop.f32.mrf.mxu1 }
 0x1b1   :  { %v2076_v11 = vmul.f32 %v5365_v8, %v5365_v8  ;;  %v2078_v12 = vpack.c.bf16 %v5365_v8, %v5365_v8 }
 0x1b3   :  { %v2080_v14 = vunpack.c.l.bf16 %v2078_v12  ;;  %v2086_v15 = vpack.c.bf16 %v2076_v11, %v2076_v11 }
 0x1b5   :  { %v2082_v17 = vsub.f32 %v5365_v8, %v2080_v14  ;;  %v2088_v18 = vunpack.c.l.bf16 %v2086_v15  ;;  %v2100_v26 = vrot.slane %v2086_v15, 6  ;;  %v2318_v14 = vld [vmem:[#allocation7 + $0x420] sm:$0x1] }
 0x1b6   :  { %v2319_v15 = vunpack.c.l.bf16 %v2318_v14  ;;  %v5099_v14 = vld [vmem:[#allocation7 + $0x124] ss:$16 sps:$4 sm:$0xff]  }
 0x1b7   :  { %v2084_v20 = vpack.c.bf16 %v2082_v17, %v2082_v17  ;;  %v2090_v21 = vsub.f32 %v2076_v11, %v2088_v18  ;;  %v2325_v18 = vunpack.c.l.bf16 %v2324_v16  ;;  %v5097_v16 = vld [vmem:[#allocation7 + $0x120] ss:$16 sps:$4 sm:$0xff]  }
 0x1b8   :  { %v2321_v17 = vrot.slane %v2319_v15, 1 }
 0x1b9   :  { %v2092_v23 = vpack.c.bf16 %v2090_v21, %v2090_v21  ;;  %v2096_v24 = vrot.slane %v2084_v20, 7  ;;  %v2327_v20 = vrot.slane %v2325_v18, 1 }
 0x1ba   :  { %v2323_v19 = vadd.f32 %v2321_v17, %v2319_v15  ;;  %v5100_v15 = vld [vmem:[#allocation7 + $0x128] ss:$16 sps:$4 sm:$0xff]  }
 0x1bb   :  { %v2104_v28 = vrot.slane %v2092_v23, 5  ;;  %v2111_v29 = vsel %vm2105_vm1, %v2078_v12, %v2096_v24  ;;  %v2329_v23 = vadd.f32 %v2327_v20, %v2325_v18  ;;  %v5101_v17 = vld [vmem:[#allocation7 + $0x28] ss:$16 sps:$4 sm:$0xff]   ;;  %v5102_v18 = vld [vmem:[#allocation7 + $0x100] ss:$16 sps:$4 sm:$0xff]  }
 0x1bc   :  { %v2116_v34 = vsel %vm2112_vm2, %v2111_v29, %v2100_v26  ;;  %v5105_v20 = vld [vmem:[#allocation7 + $0x108] ss:$16 sps:$4 sm:$0xff]  }
 0x1bd   :  { %v2122_v36 = vsel %vm2117_vm3, %v2116_v34, %v2104_v28 }
 0x1be   :  { %2284 = vmatprep.mubr.bf16.mxu0 %v2122_v36 }
 0x1bf   :  { %2285 = vmatmul.mubr.bf16.vlgmr.msra.gmra.mxu0 %v2119_v37 }
 0x1c0   :  { %4606 = vmatpush3.bf16.msra.mxu0 %v5071_v45  ;;  %v5043_v45 = vld [vmem:[#allocation7 + $0xe0] ss:$16 sps:$4 sm:$0xff]  }
 0x1c1   :  { %4607 = vmatprep.subr.bf16.mxu0 %v5075_v46 }
 0x1c4   :  { %4608 = vmatpush3.bf16.msra.mxu0 %v5076_v47  ;;  %v5048_v47 = vld [vmem:[#allocation7 + $0xc4] ss:$16 sps:$4 sm:$0xff]  }
 0x1c5   :  { %4609 = vmatprep.subr.bf16.mxu0 %v5080_v48 }
 0x1c8   :  { %4610 = vmatpush3.bf16.msra.mxu0 %v5081_v49  ;;  %v5046_v49 = vld [vmem:[#allocation7 + $0xc0] ss:$16 sps:$4 sm:$0xff]  }
 0x1c9   :  { %4611 = vmatprep.subr.bf16.mxu0 %v5085_v50  ;;  %v5051_v50 = vld [vmem:[#allocation7 + $0xa4] ss:$16 sps:$4 sm:$0xff]  }
 0x1cc   :  { %4612 = vmatpush3.bf16.msra.mxu0 %v5086_v51  ;;  %v5049_v51 = vld [vmem:[#allocation7 + $0xa0] ss:$16 sps:$4 sm:$0xff]  }
 0x27f   :  { %v4599_v52 = vpop.f32.mrf.mxu0 }
 0x281   :  { %v4600_v53 = vpop.f32.mrf.mxu0 }
 0x282   :  { %v4601_v54 = vadd.f32 %v4600_v53, %v4599_v52  ;;  %v5054_v52 = vld [vmem:[#allocation7 + $0x84] ss:$16 sps:$4 sm:$0xff]   ;;  %v5052_v53 = vld [vmem:[#allocation7 + $0x80] ss:$16 sps:$4 sm:$0xff]  }
 0x283   :  { %v4602_v55 = vpop.f32.mrf.mxu0 }
 0x284   :  { %v2293_v56 = vsel %vm2292_vm4, %v4601_v54, 0.0  ;;  %v2303_v35 = vrot.slane %v4601_v54, 4  ;;  %v5057_v54 = vld [vmem:[#allocation7 + $0x64] ss:$16 sps:$4 sm:$0xff]   ;;  %v5055_v55 = vld [vmem:[#allocation7 + $0x60] ss:$16 sps:$4 sm:$0xff]  }
 0x285   :  { %v2294_v57 = vrot.slane %v2293_v56, 4  ;;  %v4603_v58 = vpop.f32.mrf.mxu0 }
 0x286   :  { %v2305_v59 = vsel %vm2292_vm4, %v2303_v35, 0.0  ;;  %v5058_v35 = vld [vmem:[#allocation7 + $0x40] ss:$16 sps:$4 sm:$0xff]  }
 0x287   :  { %v2295_v60 = vadd.f32 %v2294_v57, %v2293_v56  ;;  %v2306_v61 = vrot.slane %v2305_v59, 4  ;;  %v5060_v56 = vld [vmem:[#allocation7 + $0x44] ss:$16 sps:$4 sm:$0xff]   ;;  %v5061_v58 = vld [vmem:[#allocation7 + $0x20] ss:$16 sps:$4 sm:$0xff]  }
 0x288   :  { %v5063_v57 = vld [vmem:[#allocation7 + $0x24] ss:$16 sps:$4 sm:$0xff]  }
 0x289   :  { %v2296_v62 = vrot.slane %v2295_v60, 2  ;;  %v2307_v63 = vadd.f32 %v2306_v61, %v2305_v59  ;;  %v5066_v59 = vld [vmem:[#allocation7 + $0x4] ss:$16 sps:$4 sm:$0xff]  }
 0x28a   :  { %v5069_v61 = vld [vmem:[#allocation7 + $0x1e4] ss:$16 sps:$4 sm:$0xff]  }
 0x28b   :  { %v2297_v0 = vadd.f32 %v2296_v62, %v2295_v60  ;;  %v2308_v1 = vrot.slane %v2307_v63, 2  ;;  %v5064_v60 = vld [vmem:[#allocation7] ss:$16 sps:$4 sm:$0xff]  }
 0x28c   :  { %v5067_v62 = vld [vmem:[#allocation7 + $0x1e0] ss:$16 sps:$4 sm:$0xff]  }
 0x28d   :  { %v2298_v2 = vrot.slane %v2297_v0, 1  ;;  %v2309_v3 = vadd.f32 %v2308_v1, %v2307_v63  ;;  %v5074_v63 = vld [vmem:[#allocation7 + $0x1c4] ss:$16 sps:$4 sm:$0xff]  }
 0x28e   :  { %v5079_v1 = vld [vmem:[#allocation7 + $0x1a4] ss:$16 sps:$4 sm:$0xff]  }
 0x28f   :  { %v2299_v4 = vadd.f32 %v2298_v2, %v2297_v0  ;;  %v2310_v5 = vrot.slane %v2309_v3, 1  ;;  %v5072_v0 = vld [vmem:[#allocation7 + $0x1c0] ss:$16 sps:$4 sm:$0xff]  }
 0x290   :  { %v5077_v2 = vld [vmem:[#allocation7 + $0x1a0] ss:$16 sps:$4 sm:$0xff]  }
 0x291   :  { %v2301_v6 = vmul.f32 0.0078125, %v2299_v4  ;;  %v2311_v7 = vadd.f32 %v2310_v5, %v2309_v3  ;;  %v5084_v3 = vld [vmem:[#allocation7 + $0x184] ss:$16 sps:$4 sm:$0xff]   ;;  %v5082_v4 = vld [vmem:[#allocation7 + $0x180] ss:$16 sps:$4 sm:$0xff]  }
 0x292   :  { %v5089_v5 = vld [vmem:[#allocation7 + $0x164] ss:$16 sps:$4 sm:$0xff]  }
 0x293   :  { %v2312_v9 = vmul.f32 0.0078125, %v2311_v7  ;;  %v2313_v10 = vmul.f32 %v2301_v6, %v2301_v6  ;;  %v5087_v7 = vld [vmem:[#allocation7 + $0x160] ss:$16 sps:$4 sm:$0xff]  }
 0x295   :  { %v2314_v11 = vsub.f32 %v2312_v9, %v2313_v10  ;;  %v5091_v9 = vld [vmem:[#allocation7 + $0x68] ss:$16 sps:$4 sm:$0xff]   ;;  %v5094_v10 = vld [vmem:[#allocation7 + $0x144] ss:$16 sps:$4 sm:$0xff]  }
 0x297   :  { %v2315_v12 = vmax.f32 %v2314_v11, 0.0  ;;  %v5095_v11 = vld [vmem:[#allocation7 + $0x148] ss:$16 sps:$4 sm:$0xff]  }
 0x299   :  { %v2316_v13 = vadd.f32 1e-05, %v2315_v12  ;;  %v5092_v12 = vld [vmem:[#allocation7 + $0x140] ss:$16 sps:$4 sm:$0xff]  }
 0x29b   :  { %5182 = vrsqrt.f32 %v2316_v13  ;;  %v5096_v13 = vld [vmem:[#allocation7 + $0x48] ss:$16 sps:$4 sm:$0xff]  }
 0x2a8   :  { %v5183_v21 = vpop.eup %5182 }
 0x2a9   :  { %v2330_v22 = vmul.f32 %v5183_v21, %v2323_v19  ;;  %v5104_v19 = vld [vmem:[#allocation7 + $0x104] ss:$16 sps:$4 sm:$0xff]   ;;  %v5106_v21 = vld [vmem:[#allocation7 + $0x8] ss:$16 sps:$4 sm:$0xff]  }
 0x2ab   :  { %v2331_v24 = vmul.f32 %v2330_v22, %v2301_v6  ;;  %v2336_v25 = vpack.c.bf16 %v2330_v22, %v2330_v22  ;;  %v5090_v6 = vld [vmem:[#allocation7 + $0x168] ss:$16 sps:$4 sm:$0xff]  }
 0x2ac   :  { %4613 = vmatprep.subr.bf16.mxu0 %v5090_v6 }
 0x2ad   :  { %v2333_v26 = vrot.slane %v2331_v24, 6  ;;  %v2337_v27 = vunpack.c.l.bf16 %v2336_v25  ;;  %4614 = vmatpush3.bf16.msra.mxu0 %v5091_v9  ;;  %v5399_v24 = vsub.s32 0, %v5315_v30 }
 0x2ae   :  { %4615 = vmatprep.subr.bf16.mxu0 %v5095_v11  ;;  %v5121_v11 = vld [vmem:[#allocation7 + $0x22c] ss:$16 sps:$4 sm:$0xff]  }
 0x2af   :  { %v2335_v28 = vsub.f32 %v2329_v23, %v2333_v26  ;;  %v2338_v29 = vsub.f32 %v2330_v22, %v2337_v27  ;;  %v5402_v27 = vsub.s32 2, %v5315_v30 }
 0x2b1   :  { %v2339_v33 = vpack.c.bf16 %v2338_v29, %v2338_v29  ;;  %v2340_v34 = vpack.c.bf16 %v2335_v28, %v2335_v28  ;;  %4616 = vmatpush3.bf16.msra.mxu0 %v5096_v13 }
 0x2b2   :  { %4617 = vmatprep.subr.bf16.mxu0 %v5100_v15 }
 0x2b3   :  { %v2341_v36 = vunpack.c.l.bf16 %v2340_v34  ;;  %v2345_v37 = vshll.u32 %v2339_v33, 16 }
 0x2b5   :  { %v2342_v39 = vsub.f32 %v2335_v28, %v2341_v36  ;;  %v2355_v42 = vsel %vm5382_vm6, %v2336_v25, %v2345_v37  ;;  %4618 = vmatpush3.bf16.msra.mxu0 %v5101_v17 }
 0x2b6   :  { %v2358_v46 = vsel %vm2105_vm1, %v2355_v42, %v2340_v34  ;;  %4619 = vmatprep.subr.bf16.mxu0 %v5105_v20 }
 0x2b7   :  { %v2343_v40 = vpack.c.bf16 %v2342_v39, %v2342_v39 }
 0x2b9   :  { %v2349_v44 = vshll.u32 %v2343_v40, 16  ;;  %4620 = vmatpush3.bf16.msra.mxu0 %v5106_v21 }
 0x2ba   :  { %4716 = vmatprep.subr.bf16.mxu0 %v5282_v31 }
 0x2bb   :  { %v2363_v48 = vsel %vm5389_vm8, %v2358_v46, %v2349_v44 }
 0x2bc   :  { %4226 = vmatmul.mubr.msk.bf16.vlgmr.msra.gmra.mxu1 %vm2370_vm9, %v2363_v48 }
 0x2bd   :  { %2774 = vmatpush1.bf16.msra.mxu1 %v5043_v45 }
 0x2be   :  { %2775 = vmatprep.subr.bf16.mxu1 %v5048_v47 }
 0x2c1   :  { %2776 = vmatpush1.bf16.msra.mxu1 %v5046_v49 }
 0x2c2   :  { %2777 = vmatprep.subr.bf16.mxu1 %v5051_v50  ;;  %v5107_v50 = vld [vmem:[#allocation5 + $0x5b8] sm:$0xff]  }
 0x2c5   :  { %2778 = vmatpush1.bf16.msra.mxu1 %v5049_v51 }
 0x2c6   :  { %2779 = vmatprep.subr.bf16.mxu1 %v5054_v52  ;;  %v5110_v52 = vld [vmem:[#allocation5 + $0x5a0] sm:$0xff]  }
 0x2c9   :  { %2780 = vmatpush1.bf16.msra.mxu1 %v5052_v53  ;;  %v5111_v53 = vld [vmem:[#allocation5 + $0x598] sm:$0xff]  }
 0x2ca   :  { %2781 = vmatprep.subr.bf16.mxu1 %v5057_v54  ;;  %v5112_v54 = vld [vmem:[#allocation5 + $0x590] sm:$0xff]  }
 0x2cd   :  { %2782 = vmatpush1.bf16.msra.mxu1 %v5055_v55  ;;  %v5113_v55 = vld [vmem:[#allocation5 + $0x588] sm:$0xff]  }
 0x2ce   :  { %2783 = vmatprep.subr.bf16.mxu1 %v5060_v56  ;;  %v5114_v56 = vld [vmem:[#allocation5 + $0x580] sm:$0xff]  }
 0x2d1   :  { %2784 = vmatpush1.bf16.msra.mxu1 %v5058_v35  ;;  %v5115_v35 = vld [vmem:[#allocation7 + $0x2ec] ss:$16 sps:$4 sm:$0xff]  }
 0x2d2   :  { %2785 = vmatprep.subr.bf16.mxu1 %v5063_v57  ;;  %v5116_v57 = vld [vmem:[#allocation7 + $0x2cc] ss:$16 sps:$4 sm:$0xff]  }
 0x2d5   :  { %2786 = vmatpush1.bf16.msra.mxu1 %v5061_v58  ;;  %v5117_v58 = vld [vmem:[#allocation7 + $0x2ac] ss:$16 sps:$4 sm:$0xff]  }
 0x2d6   :  { %2787 = vmatprep.subr.bf16.mxu1 %v5066_v59  ;;  %v5118_v59 = vld [vmem:[#allocation7 + $0x28c] ss:$16 sps:$4 sm:$0xff]  }
 0x2d9   :  { %2788 = vmatpush1.bf16.msra.mxu1 %v5064_v60  ;;  %v5119_v60 = vld [vmem:[#allocation7 + $0x26c] ss:$16 sps:$4 sm:$0xff]  }
 0x2da   :  { %2789 = vmatprep.subr.bf16.mxu1 %v5069_v61 }
 0x2dd   :  { %2790 = vmatpush2.bf16.msra.mxu1 %v5067_v62 }
 0x2de   :  { %2791 = vmatprep.subr.bf16.mxu1 %v5074_v63 }
 0x2e1   :  { %2792 = vmatpush2.bf16.msra.mxu1 %v5072_v0 }
 0x2e2   :  { %2793 = vmatprep.subr.bf16.mxu1 %v5079_v1 }
 0x2e5   :  { %2794 = vmatpush2.bf16.msra.mxu1 %v5077_v2 }
 0x2e6   :  { %2795 = vmatprep.subr.bf16.mxu1 %v5084_v3 }
 0x2e9   :  { %2796 = vmatpush2.bf16.msra.mxu1 %v5082_v4 }
 0x2ea   :  { %2797 = vmatprep.subr.bf16.mxu1 %v5089_v5 }
 0x2ed   :  { %2798 = vmatpush2.bf16.msra.mxu1 %v5087_v7 }
 0x2ee   :  { %2799 = vmatprep.subr.bf16.mxu1 %v5094_v10  ;;  %v5120_v10 = vld [vmem:[#allocation7 + $0x24c] ss:$16 sps:$4 sm:$0xff]  }
 0x2f1   :  { %2800 = vmatpush2.bf16.msra.mxu1 %v5092_v12  ;;  %v5122_v12 = vld [vmem:[#allocation7 + $0x20c] ss:$16 sps:$4 sm:$0xff]  }
 0x2f2   :  { %2801 = vmatprep.subr.bf16.mxu1 %v5099_v14 }
 0x2f5   :  { %2802 = vmatpush2.bf16.msra.mxu1 %v5097_v16 }
 0x2f6   :  { %2803 = vmatprep.subr.bf16.mxu1 %v5104_v19 }
 0x2f9   :  { %2804 = vmatpush2.bf16.msra.mxu1 %v5102_v18 }
 0x2fa   :  { %4736 = vmatprep.subr.bf16.mxu1 %v5282_v31 }
 0x37c   :  { %v2414_v22 = vpop.f32.mrf.mxu1 }
 0x37d   :  { %v2423_v23 = vrot.slane %v2414_v22, 1 }
 0x37e   :  { %v2416_v25 = vpop.f32.mrf.mxu1 }
 0x37f   :  { %v2427_v26 = vadd.f32 %v2423_v23, %v2414_v22  ;;  %v2424_v28 = vrot.slane %v2416_v25, 1 }
 0x380   :  { %v2418_v29 = vpop.f32.mrf.mxu1 }
 0x381   :  { %v2432_v33 = vrot.slane %v2427_v26, %v5399_v24  ;;  %v2428_v34 = vadd.f32 %v2424_v28, %v2416_v25  ;;  %v2442_v39 = vrot.slane %v2427_v26, %v5402_v27 }
 0x382   :  { %v2419_v36 = vpop.f32.mrf.mxu1 }
 0x383   :  { %v2437_v37 = vmul.f32 %v2432_v33, %v5358_v32  ;;  %v2436_v40 = vrot.slane %v2428_v34, %v5399_v24  ;;  %v2446_v45 = vrot.slane %v2428_v34, %v5402_v27  ;;  %v5108_v32 = vld [vmem:[#allocation5 + $0x5b0] sm:$0xff]  }
 0x385   :  { %v2447_v42 = vadd.f32 %v2442_v39, %v2437_v37  ;;  %v2438_v44 = vmul.f32 %v2436_v40, %v5365_v8  ;;  %v5109_v8 = vld [vmem:[#allocation5 + $0x5a8] sm:$0xff]   ;;  %v3161_v39 = vld [vmem:[#allocation7 + $0x3a0] sm:$0xf] }
 0x386   :  { %v3168_v40 = vsel %vm3166_vm10, %v3161_v39, 0 }
 0x387   :  { %v2448_v46 = vadd.f32 %v2446_v45, %v2438_v44  ;;  %v2449_v47 = vmax.f32 %v2447_v42, 0.0  ;;  %v5125_v42 = vld [vmem:[#allocation7 + $0x2e4] ss:$16 sps:$4 sm:$0xff]   ;;  %v5126_v44 = vld [vmem:[#allocation7 + $0x2e8] ss:$16 sps:$4 sm:$0xff]  }
 0x388   :  { %v5130_v45 = vld [vmem:[#allocation7 + $0x2c8] ss:$16 sps:$4 sm:$0xff]  }
 0x389   :  { %v2450_v48 = vmax.f32 %v2448_v46, 0.0  ;;  %v2451_v51 = vpack.c.bf16 %v2449_v47, %v2449_v47  ;;  %v5134_v46 = vld [vmem:[#allocation7 + $0x2a8] ss:$16 sps:$4 sm:$0xff]  }
 0x38a   :  { %v5138_v47 = vld [vmem:[#allocation7 + $0x288] ss:$16 sps:$4 sm:$0xff]  }
 0x38b   :  { %v2452_v49 = vpack.c.bf16 %v2450_v48, %v2450_v48 }
 0x38d   :  { %2805 = vmatprep.mubr.bf16.mxu1 %v2452_v49  ;;  %2846 = vmatprep.mubr.bf16.mxu0 %v2452_v49 }
 0x38e   :  { %2806 = vmatmul.mubr.bf16.vlgmr.msra.gmra.mxu1 %v2451_v51  ;;  %2847 = vmatmul.mubr.bf16.vlgmr.msra.gmra.mxu0 %v2451_v51 }
 0x38f   :  { %4717 = vmatpush3.bf16.msra.mxu0 %v5107_v50  ;;  %4732 = vmatprep.mubr.msk.bf16.mxu0 %vm5283_vm0, %v5282_v31 }
 0x390   :  { %4718 = vmatprep.subr.bf16.mxu0 %v5282_v31  ;;  %4752 = vmatprep.mubr.msk.bf16.mxu1 %vm5283_vm0, %v5282_v31 }
 0x391   :  { %4737 = vmatpush3.bf16.msra.mxu1 %v5115_v35 }
 0x392   :  { %4738 = vmatprep.subr.bf16.mxu1 %v5282_v31 }
 0x393   :  { %4719 = vmatpush3.bf16.msra.mxu0 %v5108_v32 }
 0x394   :  { %4720 = vmatprep.subr.bf16.mxu0 %v5282_v31 }
 0x395   :  { %4739 = vmatpush3.bf16.msra.mxu1 %v5116_v57 }
 0x396   :  { %4740 = vmatprep.subr.bf16.mxu1 %v5282_v31 }
 0x397   :  { %4721 = vmatpush3.bf16.msra.mxu0 %v5109_v8 }
 0x398   :  { %4722 = vmatprep.subr.bf16.mxu0 %v5282_v31 }
 0x399   :  { %4741 = vmatpush3.bf16.msra.mxu1 %v5117_v58 }
 0x39a   :  { %4742 = vmatprep.subr.bf16.mxu1 %v5282_v31 }
 0x39b   :  { %4723 = vmatpush3.bf16.msra.mxu0 %v5110_v52 }
 0x39c   :  { %4724 = vmatprep.subr.bf16.mxu0 %v5282_v31 }
 0x39d   :  { %4743 = vmatpush3.bf16.msra.mxu1 %v5118_v59 }
 0x39e   :  { %4744 = vmatprep.subr.bf16.mxu1 %v5282_v31 }
 0x39f   :  { %4725 = vmatpush3.bf16.msra.mxu0 %v5111_v53 }
 0x3a0   :  { %4726 = vmatprep.subr.bf16.mxu0 %v5282_v31 }
 0x3a1   :  { %4745 = vmatpush3.bf16.msra.mxu1 %v5119_v60 }
 0x3a2   :  { %4746 = vmatprep.subr.bf16.mxu1 %v5282_v31 }
 0x3a3   :  { %4727 = vmatpush3.bf16.msra.mxu0 %v5112_v54 }
 0x3a4   :  { %4728 = vmatprep.subr.bf16.mxu0 %v5282_v31 }
 0x3a5   :  { %4747 = vmatpush3.bf16.msra.mxu1 %v5120_v10 }
 0x3a6   :  { %4748 = vmatprep.subr.bf16.mxu1 %v5282_v31 }
 0x3a7   :  { %4729 = vmatpush3.bf16.msra.mxu0 %v5113_v55 }
 0x3a8   :  { %4730 = vmatprep.subr.bf16.mxu0 %v5282_v31 }
 0x3a9   :  { %4749 = vmatpush3.bf16.msra.mxu1 %v5121_v11 }
 0x3aa   :  { %4750 = vmatprep.subr.bf16.mxu1 %v5282_v31 }
 0x3ab   :  { %4731 = vmatpush3.bf16.msra.mxu0 %v5114_v56 }
 0x3ac   :  { %4756 = vmatprep.subr.bf16.mxu0 %v5282_v31 }
 0x3ad   :  { %4751 = vmatpush3.bf16.msra.mxu1 %v5122_v12 }
 0x3ae   :  { %4762 = vmatprep.subr.bf16.mxu1 %v5282_v31 }
 0x44e   :  { %v2807_v61 = vpop.f32.mrf.mxu1  ;;  %v4621_v62 = vpop.f32.mrf.mxu0 }
 0x450   :  { %v2809_v63 = vpop.f32.mrf.mxu1  ;;  %v4622_v0 = vpop.f32.mrf.mxu0 }
 0x451   :  { %v2854_v1 = vmax.f32 %v2807_v61, %v2809_v63  ;;  %v4623_v2 = vadd.f32 %v4622_v0, %v4621_v62 }
 0x452   :  { %v2811_v3 = vpop.f32.mrf.mxu1  ;;  %v4624_v4 = vpop.f32.mrf.mxu0 }
 0x453   :  { %v2855_v5 = vmax.f32 %v2854_v1, %v4623_v2 }
 0x454   :  { %v2812_v6 = vpop.f32.mrf.mxu1  ;;  %v4625_v7 = vpop.f32.mrf.mxu0 }
 0x455   :  { %v2856_v9 = vpack.c.bf16 %v2855_v5, %v2855_v5  ;;  %v3114_v6 = vld [vmem:[#allocation7 + $0x420] sm:$0x4] }
 0x456   :  { %v3115_v7 = vunpack.c.l.bf16 %v3114_v6 }
 0x457   :  { %4733 = vmatmul.mubr.bf16.vlgmr.msra.gmra.mxu0 %v2856_v9  ;;  %v3120_v9 = vld [vmem:[#allocation7 + $0x420] sm:$0x8] }
 0x458   :  { %4758 = vmatprep.mubr.msk.bf16.mxu0 %vm5283_vm0, %v5282_v31  ;;  %4757 = vmatpush3.bf16.msra.mxu0 %v3168_v40  ;;  %v3117_v10 = vrot.slane %v3115_v7, 1  ;;  %v3121_v11 = vunpack.c.l.bf16 %v3120_v9 }
 0x459   :  { %3386 = vmatprep.subr.bf16.mxu0 %v5125_v42 }
 0x45a   :  { %v3119_v12 = vadd.f32 %v3117_v10, %v3115_v7 }
 0x517   :  { %v5432_v13 = vpop.f32.mrf.mxu0 }
 0x518   :  { %v2961_v14 = vmul.f32 %v5432_v13, %v5432_v13  ;;  %v2962_v15 = vpack.c.bf16 %v5432_v13, %v5432_v13 }
 0x519   :  { %v4734_v16 = vpop.f32.mrf.mxu0 }
 0x51a   :  { %v2963_v17 = vunpack.c.l.bf16 %v2962_v15  ;;  %v2966_v18 = vpack.c.bf16 %v2961_v14, %v2961_v14 }
 0x51b   :  { %v2958_v19 = vpop.f32.mrf.mxu0 }
 0x51c   :  { %v2964_v20 = vsub.f32 %v5432_v13, %v2963_v17  ;;  %v2967_v21 = vunpack.c.l.bf16 %v2966_v18  ;;  %v2973_v29 = vrot.slane %v2966_v18, 6 }
 0x51d   :  { %v4735_v22 = vpop.f32.mrf.mxu0 }
 0x51e   :  { %v2965_v23 = vpack.c.bf16 %v2964_v20, %v2964_v20  ;;  %v2968_v25 = vsub.f32 %v2961_v14, %v2967_v21  ;;  %v3123_v14 = vrot.slane %v3121_v11, 1 }
 0x520   :  { %v2969_v26 = vpack.c.bf16 %v2968_v25, %v2968_v25  ;;  %v2971_v28 = vrot.slane %v2965_v23, 7  ;;  %v3125_v17 = vadd.f32 %v3123_v14, %v3121_v11  ;;  %v5155_v11 = vld [vmem:[#allocation5 + $0x5d8] sm:$0xff]   ;;  %v5156_v14 = vld [vmem:[#allocation5 + $0x5d0] sm:$0xff]  }
 0x522   :  { %v2975_v33 = vrot.slane %v2969_v26, 5  ;;  %v2978_v34 = vsel %vm2105_vm1, %v2962_v15, %v2971_v28 }
 0x523   :  { %v2980_v36 = vsel %vm2112_vm2, %v2978_v34, %v2973_v29 }
 0x524   :  { %v2982_v37 = vsel %vm2117_vm3, %v2980_v36, %v2975_v33 }
 0x525   :  { %4753 = vmatmul.mubr.bf16.vlgmr.msra.gmra.mxu1 %v2982_v37 }
 0x526   :  { %4778 = vmatprep.mubr.msk.bf16.mxu1 %vm5283_vm0, %v5282_v31  ;;  %4763 = vmatpush3.bf16.msra.mxu1 %v5126_v44 }
 0x527   :  { %4764 = vmatprep.subr.bf16.mxu1 %v5282_v31 }
 0x52a   :  { %4765 = vmatpush3.bf16.msra.mxu1 %v5130_v45  ;;  %v5123_v45 = vld [vmem:[#allocation7 + $0x2e0] ss:$16 sps:$4 sm:$0xff]  }
 0x52b   :  { %4766 = vmatprep.subr.bf16.mxu1 %v5282_v31 }
 0x52e   :  { %4767 = vmatpush3.bf16.msra.mxu1 %v5134_v46 }
 0x52f   :  { %4768 = vmatprep.subr.bf16.mxu1 %v5282_v31 }
 0x532   :  { %4769 = vmatpush3.bf16.msra.mxu1 %v5138_v47  ;;  %v5129_v47 = vld [vmem:[#allocation7 + $0x2c4] ss:$16 sps:$4 sm:$0xff]  }
 0x533   :  { %4770 = vmatprep.subr.bf16.mxu1 %v5282_v31 }
 0x5e5   :  { %v3082_v48 = vpop.f32.mrf.mxu1 }
 0x5e6   :  { %v3089_v49 = vsel %vm3088_vm11, %v3082_v48, 0.0  ;;  %v3099_v50 = vrot.slane %v3082_v48, 4 }
 0x5e7   :  { %v3090_v51 = vrot.slane %v3089_v49, 4  ;;  %v4754_v32 = vpop.f32.mrf.mxu1 }
 0x5e8   :  { %v3101_v8 = vsel %vm3088_vm11, %v3099_v50, 0.0  ;;  %v5133_v50 = vld [vmem:[#allocation7 + $0x2a4] ss:$16 sps:$4 sm:$0xff]  }
 0x5e9   :  { %v3091_v52 = vadd.f32 %v3090_v51, %v3089_v49  ;;  %v3102_v53 = vrot.slane %v3101_v8, 4  ;;  %v3085_v54 = vpop.f32.mrf.mxu1  ;;  %v5127_v49 = vld [vmem:[#allocation7 + $0x2c0] ss:$16 sps:$4 sm:$0xff]   ;;  %v5137_v32 = vld [vmem:[#allocation7 + $0x284] ss:$16 sps:$4 sm:$0xff]  }
 0x5ea   :  { %v5131_v51 = vld [vmem:[#allocation7 + $0x2a0] ss:$16 sps:$4 sm:$0xff]   ;;  %v5142_v54 = vld [vmem:[#allocation7 + $0x268] ss:$16 sps:$4 sm:$0xff]  }
 0x5eb   :  { %v3092_v55 = vrot.slane %v3091_v52, 2  ;;  %v3103_v56 = vadd.f32 %v3102_v53, %v3101_v8  ;;  %v4755_v35 = vpop.f32.mrf.mxu1  ;;  %v5135_v8 = vld [vmem:[#allocation7 + $0x280] ss:$16 sps:$4 sm:$0xff]   ;;  %4771 = vmatpush3.bf16.msra.mxu1 %v5142_v54 }
 0x5ec   :  { %v5139_v53 = vld [vmem:[#allocation7 + $0x260] ss:$16 sps:$4 sm:$0xff]   ;;  %4772 = vmatprep.subr.bf16.mxu1 %v5282_v31  ;;  %v5146_v35 = vld [vmem:[#allocation7 + $0x248] ss:$16 sps:$4 sm:$0xff]  }
 0x5ed   :  { %v3093_v57 = vadd.f32 %v3092_v55, %v3091_v52  ;;  %v3104_v58 = vrot.slane %v3103_v56, 2  ;;  %v5141_v52 = vld [vmem:[#allocation7 + $0x264] ss:$16 sps:$4 sm:$0xff]  }
 0x5ee   :  { %v5145_v55 = vld [vmem:[#allocation7 + $0x244] ss:$16 sps:$4 sm:$0xff]  }
 0x5ef   :  { %v3094_v59 = vrot.slane %v3093_v57, 1  ;;  %v3105_v60 = vadd.f32 %v3104_v58, %v3103_v56  ;;  %v5143_v56 = vld [vmem:[#allocation7 + $0x240] ss:$16 sps:$4 sm:$0xff]   ;;  %4773 = vmatpush3.bf16.msra.mxu1 %v5146_v35 }
 0x5f0   :  { %4774 = vmatprep.subr.bf16.mxu1 %v5282_v31  ;;  %v5147_v58 = vld [vmem:[#allocation7 + $0x220] ss:$16 sps:$4 sm:$0xff]  }
 0x5f1   :  { %v3095_v61 = vadd.f32 %v3094_v59, %v3093_v57  ;;  %v3106_v62 = vrot.slane %v3105_v60, 1  ;;  %v5149_v57 = vld [vmem:[#allocation7 + $0x224] ss:$16 sps:$4 sm:$0xff]   ;;  %v5150_v59 = vld [vmem:[#allocation7 + $0x228] ss:$16 sps:$4 sm:$0xff]  }
 0x5f2   :  { %v5163_v35 = vld [vmem:[#allocation7 + $0x3c0] ss:$16 sps:$4 sm:$0xff]  }
 0x5f3   :  { %v3097_v63 = vmul.f32 0.03125, %v3095_v61  ;;  %v3107_v0 = vadd.f32 %v3106_v62, %v3105_v60  ;;  %4775 = vmatpush3.bf16.msra.mxu1 %v5150_v59  ;;  %v5153_v60 = vld [vmem:[#allocation7 + $0x204] ss:$16 sps:$4 sm:$0xff]   ;;  %v5151_v61 = vld [vmem:[#allocation7 + $0x200] ss:$16 sps:$4 sm:$0xff]  }
 0x5f4   :  { %4776 = vmatprep.subr.bf16.mxu1 %v5282_v31  ;;  %v5154_v62 = vld [vmem:[#allocation7 + $0x208] ss:$16 sps:$4 sm:$0xff]  }
 0x5f5   :  { %v3108_v1 = vmul.f32 0.03125, %v3107_v0  ;;  %v3109_v2 = vmul.f32 %v3097_v63, %v3097_v63 }
 0x5f7   :  { %v3110_v3 = vsub.f32 %v3108_v1, %v3109_v2  ;;  %4777 = vmatpush3.bf16.msra.mxu1 %v5154_v62 }
 0x5f8   :  { %4794 = vmatprep.subr.bf16.mxu1 %v5282_v31 }
 0x5f9   :  { %v3111_v4 = vmax.f32 %v3110_v3, 0.0 }
 0x5fb   :  { %v3112_v5 = vadd.f32 1e-05, %v3111_v4 }
 0x5fd   :  { %5184 = vrsqrt.f32 %v3112_v5 }
 0x60a   :  { %v5185_v15 = vpop.eup %5184 }
 0x60b   :  { %v3126_v16 = vmul.f32 %v5185_v15, %v3119_v12  ;;  %v5158_v15 = vld [vmem:[#allocation5 + $0x5c0] sm:$0xff]  }
 0x60d   :  { %v3127_v18 = vmul.f32 %v3126_v16, %v3097_v63  ;;  %v3132_v19 = vpack.c.bf16 %v3126_v16, %v3126_v16 }
 0x60f   :  { %v3129_v20 = vrot.slane %v3127_v18, 6  ;;  %v3133_v21 = vunpack.c.l.bf16 %v3132_v19  ;;  %v3141_v37 = vrot.slane %v3132_v19, 2 }
 0x611   :  { %v3131_v22 = vsub.f32 %v3125_v17, %v3129_v20  ;;  %v3134_v23 = vsub.f32 %v3126_v16, %v3133_v21  ;;  %v5159_v16 = vld [vmem:[#allocation7 + $0x36c] ss:$16 sps:$4 sm:$0xff]  }
 0x613   :  { %v3136_v25 = vpack.c.bf16 %v3131_v22, %v3131_v22  ;;  %v3135_v26 = vpack.c.bf16 %v3134_v23, %v3134_v23 }
 0x615   :  { %v3137_v28 = vunpack.c.l.bf16 %v3136_v25  ;;  %v3144_v29 = vshll.u32 %v3135_v26, 16  ;;  %v3149_v42 = vrot.slane %v3136_v25, 2 }
 0x617   :  { %v3138_v33 = vsub.f32 %v3131_v22, %v3137_v28  ;;  %v3146_v34 = vrot.slane %v3144_v29, 2 }
 0x619   :  { %v3139_v36 = vpack.c.bf16 %v3138_v33, %v3138_v33  ;;  %v3155_v40 = vsel %vm5382_vm6, %v3141_v37, %v3146_v34  ;;  %v5160_v33 = vld [vmem:[#allocation7 + $0x34c] ss:$16 sps:$4 sm:$0xff]  }
 0x61a   :  { %v3158_v46 = vsel %vm2105_vm1, %v3155_v40, %v3149_v42  ;;  %v5161_v34 = vld [vmem:[#allocation7 + $0x32c] ss:$16 sps:$4 sm:$0xff]  }
 0x61b   :  { %v3151_v39 = vshll.u32 %v3139_v36, 16  ;;  %v5162_v36 = vld [vmem:[#allocation7 + $0x30c] ss:$16 sps:$4 sm:$0xff]  }
 0x61d   :  { %v3153_v44 = vrot.slane %v3151_v39, 2 }
 0x61f   :  { %v3160_v48 = vsel %vm5389_vm8, %v3158_v46, %v3153_v44 }
 0x620   :  { %4759 = vmatmul.mubr.msk.bf16.vlgmr.msra.gmra.mxu0 %vm3162_vm12, %v3160_v48 }
 0x621   :  { %3387 = vmatpush1.bf16.msra.mxu0 %v5123_v45  ;;  %3418 = vmatprep.mubr.bf16.mxu0 %v5284_v41 }
 0x622   :  { %3388 = vmatprep.subr.bf16.mxu0 %v5129_v47 }
 0x625   :  { %3389 = vmatpush1.bf16.msra.mxu0 %v5127_v49 }
 0x626   :  { %3390 = vmatprep.subr.bf16.mxu0 %v5133_v50 }
 0x629   :  { %3391 = vmatpush1.bf16.msra.mxu0 %v5131_v51 }
 0x62a   :  { %3392 = vmatprep.subr.bf16.mxu0 %v5137_v32 }
 0x62d   :  { %3393 = vmatpush1.bf16.msra.mxu0 %v5135_v8 }
 0x62e   :  { %3394 = vmatprep.subr.bf16.mxu0 %v5141_v52 }
 0x631   :  { %3395 = vmatpush1.bf16.msra.mxu0 %v5139_v53 }
 0x632   :  { %3396 = vmatprep.subr.bf16.mxu0 %v5145_v55 }
 0x635   :  { %3397 = vmatpush1.bf16.msra.mxu0 %v5143_v56 }
 0x636   :  { %3398 = vmatprep.subr.bf16.mxu0 %v5149_v57  ;;  %v5164_v57 = vld [vmem:[#allocation7 + $0x360] ss:$16 sps:$4 sm:$0xff]  }
 0x639   :  { %3399 = vmatpush1.bf16.msra.mxu0 %v5147_v58  ;;  %v5166_v58 = vld [vmem:[#allocation7 + $0x364] ss:$16 sps:$4 sm:$0xff]  }
 0x63a   :  { %3400 = vmatprep.subr.bf16.mxu0 %v5153_v60 }
 0x63d   :  { %3401 = vmatpush1.bf16.msra.mxu0 %v5151_v61 }
 0x63e   :  { %4782 = vmatprep.subr.bf16.mxu0 %v5282_v31 }
 0x6e0   :  { %v3204_v63 = vpop.f32.mrf.mxu0 }
 0x6e1   :  { %v3211_v0 = vrot.slane %v3204_v63, 1 }
 0x6e2   :  { %v4760_v1 = vpop.f32.mrf.mxu0 }
 0x6e3   :  { %v3213_v2 = vadd.f32 %v3211_v0, %v3204_v63 }
 0x6e4   :  { %v3207_v3 = vpop.f32.mrf.mxu0 }
 0x6e5   :  { %v3217_v4 = vrot.slane %v3213_v2, %v5399_v24  ;;  %v3222_v7 = vrot.slane %v3213_v2, %v5402_v27 }
 0x6e6   :  { %v4761_v5 = vpop.f32.mrf.mxu0 }
 0x6e7   :  { %v3218_v6 = vmul.f32 %v3217_v4, %v5432_v13  ;;  %v5157_v13 = vld [vmem:[#allocation5 + $0x5c8] sm:$0xff]  }
 0x6e9   :  { %v3223_v9 = vadd.f32 %v3222_v7, %v3218_v6 }
 0x6eb   :  { %v3224_v10 = vmax.f32 %v3223_v9, 0.0 }
 0x6ed   :  { %v3225_v12 = vpack.c.bf16 %v3224_v10, %v3224_v10 }
 0x6ef   :  { %3419 = vmatmul.mubr.bf16.vlgmr.msra.gmra.mxu0 %v3225_v12  ;;  %4779 = vmatmul.mubr.bf16.vlgmr.msra.gmra.mxu1 %v3225_v12 }
 0x6f0   :  { %4783 = vmatpush3.bf16.msra.mxu0 %v5155_v11  ;;  %4790 = vmatprep.mubr.msk.bf16.mxu0 %vm5283_vm0, %v5282_v31 }
 0x6f1   :  { %4784 = vmatprep.subr.bf16.mxu0 %v5282_v31  ;;  %4802 = vmatprep.mubr.msk.bf16.mxu1 %vm5283_vm0, %v5282_v31 }
 0x6f2   :  { %4795 = vmatpush3.bf16.msra.mxu1 %v5159_v16 }
 0x6f3   :  { %4796 = vmatprep.subr.bf16.mxu1 %v5282_v31 }
 0x6f4   :  { %4785 = vmatpush3.bf16.msra.mxu0 %v5156_v14 }
 0x6f5   :  { %4786 = vmatprep.subr.bf16.mxu0 %v5282_v31 }
 0x6f6   :  { %4797 = vmatpush3.bf16.msra.mxu1 %v5160_v33 }
 0x6f7   :  { %4798 = vmatprep.subr.bf16.mxu1 %v5282_v31 }
 0x6f8   :  { %4787 = vmatpush3.bf16.msra.mxu0 %v5157_v13 }
 0x6f9   :  { %4788 = vmatprep.subr.bf16.mxu0 %v5282_v31 }
 0x6fa   :  { %4799 = vmatpush3.bf16.msra.mxu1 %v5161_v34 }
 0x6fb   :  { %4800 = vmatprep.subr.bf16.mxu1 %v5282_v31 }
 0x6fc   :  { %4789 = vmatpush3.bf16.msra.mxu0 %v5158_v15 }
 0x6fd   :  { %4806 = vmatprep.subr.bf16.mxu0 %v5282_v31 }
 0x6fe   :  { %4801 = vmatpush3.bf16.msra.mxu1 %v5162_v36 }
 0x6ff   :  { %3867 = vmatprep.subr.bf16.mxu1 %v5166_v58  ;;  %v5178_v58 = vld [vmem:[#allocation7 + $0x304] ss:$16 sps:$4 sm:$0xff]  }
 0x7af   :  { %v3420_v17 = vpop.f32.mrf.mxu0  ;;  %v3461_v18 = vpop.f32.mrf.mxu1 }
 0x7b1   :  { %v3422_v19 = vpop.f32.mrf.mxu0  ;;  %v4780_v20 = vpop.f32.mrf.mxu1 }
 0x7b2   :  { %v3467_v21 = vmax.f32 %v3420_v17, %v3422_v19  ;;  %v3668_v20 = vld [vmem:[#allocation7 + $0x430] sm:$0x1] }
 0x7b3   :  { %v3424_v22 = vpop.f32.mrf.mxu0  ;;  %v3464_v23 = vpop.f32.mrf.mxu1 }
 0x7b4   :  { %v3468_v25 = vmax.f32 %v3467_v21, %v3461_v18  ;;  %v3669_v21 = vunpack.c.l.bf16 %v3668_v20  ;;  %v3674_v22 = vld [vmem:[#allocation7 + $0x430] sm:$0x2] }
 0x7b5   :  { %v3425_v26 = vpop.f32.mrf.mxu0  ;;  %v4781_v28 = vpop.f32.mrf.mxu1 }
 0x7b6   :  { %v3469_v29 = vpack.c.bf16 %v3468_v25, %v3468_v25  ;;  %v3671_v23 = vrot.slane %v3669_v21, 1  ;;  %v3675_v25 = vunpack.c.l.bf16 %v3674_v22 }
 0x7b8   :  { %4791 = vmatmul.mubr.msk.bf16.vlgmr.msra.gmra.mxu0 %vm3502_vm13, %v3469_v29  ;;  %v3673_v26 = vadd.f32 %v3671_v23, %v3669_v21  ;;  %v3677_v28 = vrot.slane %v3675_v25, 1 }
 0x7b9   :  { %4808 = vmatprep.mubr.msk.bf16.mxu0 %vm5283_vm0, %v5282_v31  ;;  %4807 = vmatpush3.bf16.msra.mxu0 %v5163_v35  ;;  %v5171_v35 = vld [vmem:[#allocation7 + $0x348] ss:$16 sps:$4 sm:$0xff]  }
 0x7ba   :  { %4812 = vmatprep.subr.bf16.mxu0 %v5282_v31  ;;  %v3679_v34 = vadd.f32 %v3677_v28, %v3675_v25 }
 0x878   :  { %v5476_v37 = vpop.f32.mrf.mxu0 }
 0x879   :  { %v3546_v39 = vmul.f32 %v5476_v37, %v5476_v37  ;;  %v3547_v40 = vpack.c.bf16 %v5476_v37, %v5476_v37 }
 0x87a   :  { %v4792_v42 = vpop.f32.mrf.mxu0 }
 0x87b   :  { %v3548_v44 = vunpack.c.l.bf16 %v3547_v40  ;;  %v3551_v45 = vpack.c.bf16 %v3546_v39, %v3546_v39 }
 0x87c   :  { %v3543_v46 = vpop.f32.mrf.mxu0 }
 0x87d   :  { %v3549_v47 = vsub.f32 %v5476_v37, %v3548_v44  ;;  %v3552_v48 = vunpack.c.l.bf16 %v3551_v45  ;;  %v3558_v52 = vrot.slane %v3551_v45, 6 }
 0x87e   :  { %v4793_v49 = vpop.f32.mrf.mxu0 }
 0x87f   :  { %v3550_v50 = vpack.c.bf16 %v3549_v47, %v3549_v47  ;;  %v3553_v51 = vsub.f32 %v3546_v39, %v3552_v48 }
 0x881   :  { %v3554_v32 = vpack.c.bf16 %v3553_v51, %v3553_v51  ;;  %v3556_v8 = vrot.slane %v3550_v50, 7 }
 0x883   :  { %v3560_v53 = vrot.slane %v3554_v32, 5  ;;  %v3563_v54 = vsel %vm2105_vm1, %v3547_v40, %v3556_v8 }
 0x884   :  { %v3565_v55 = vsel %vm2112_vm2, %v3563_v54, %v3558_v52  ;;  %v5167_v54 = vld [vmem:[#allocation7 + $0x368] ss:$16 sps:$4 sm:$0xff]  }
 0x885   :  { %v3567_v56 = vsel %vm2117_vm3, %v3565_v55, %v3560_v53  ;;  %v5170_v55 = vld [vmem:[#allocation7 + $0x344] ss:$16 sps:$4 sm:$0xff]  }
 0x886   :  { %4803 = vmatmul.mubr.msk.bf16.vlgmr.msra.gmra.mxu1 %vm3502_vm13, %v3567_v56  ;;  %v5168_v56 = vld [vmem:[#allocation7 + $0x340] ss:$16 sps:$4 sm:$0xff]  }
 0x887   :  { %3891 = vmatprep.mubr.bf16.mxu1 %v5284_v41  ;;  %3868 = vmatpush1.bf16.msra.mxu1 %v5164_v57  ;;  %v5172_v57 = vld [vmem:[#allocation7 + $0x320] ss:$16 sps:$4 sm:$0xff]  }
 0x888   :  { %3869 = vmatprep.subr.bf16.mxu1 %v5170_v55 }
 0x88b   :  { %3870 = vmatpush1.bf16.msra.mxu1 %v5168_v56 }
 0x88c   :  { %3871 = vmatprep.subr.bf16.mxu1 %v5174_v38 }
 0x88f   :  { %3872 = vmatpush1.bf16.msra.mxu1 %v5172_v57 }
 0x890   :  { %3873 = vmatprep.subr.bf16.mxu1 %v5178_v58 }
 0x946   :  { %v3636_v59 = vpop.f32.mrf.mxu1 }
 0x947   :  { %v3643_v60 = vsel %vm3642_vm14, %v3636_v59, 0.0  ;;  %v3653_v61 = vrot.slane %v3636_v59, 4  ;;  %v5176_v59 = vld [vmem:[#allocation7 + $0x300] ss:$16 sps:$4 sm:$0xff]  }
 0x948   :  { %v3644_v62 = vrot.slane %v3643_v60, 4  ;;  %v4804_v63 = vpop.f32.mrf.mxu1  ;;  %3874 = vmatpush1.bf16.msra.mxu1 %v5176_v59 }
 0x949   :  { %v3655_v0 = vsel %vm3642_vm14, %v3653_v61, 0.0  ;;  %4824 = vmatprep.subr.bf16.mxu1 %v5282_v31 }
 0x94a   :  { %v3645_v1 = vadd.f32 %v3644_v62, %v3643_v60  ;;  %v3656_v2 = vrot.slane %v3655_v0, 4  ;;  %v3639_v3 = vpop.f32.mrf.mxu1  ;;  %v5179_v60 = vld [vmem:[#allocation7 + $0x308] ss:$16 sps:$4 sm:$0xff]  }
 0x94c   :  { %v3646_v4 = vrot.slane %v3645_v1, 2  ;;  %v3657_v41 = vadd.f32 %v3656_v2, %v3655_v0  ;;  %v4805_v5 = vpop.f32.mrf.mxu1 }
 0x94e   :  { %v3647_v6 = vadd.f32 %v3646_v4, %v3645_v1  ;;  %v3658_v7 = vrot.slane %v3657_v41, 2 }
 0x950   :  { %v3648_v9 = vrot.slane %v3647_v6, 1  ;;  %v3659_v10 = vadd.f32 %v3658_v7, %v3657_v41 }
 0x952   :  { %v3649_v11 = vadd.f32 %v3648_v9, %v3647_v6  ;;  %v3660_v12 = vrot.slane %v3659_v10, 1  ;;  %v5180_v9 = vld [vmem:[#allocation7 + $0x400] ss:$16 sps:$4 sm:$0xff]  }
 0x954   :  { %v3651_v14 = vmul.f32 0.125, %v3649_v11  ;;  %v3661_v13 = vadd.f32 %v3660_v12, %v3659_v10 }
 0x956   :  { %v3662_v15 = vmul.f32 0.125, %v3661_v13  ;;  %v3663_v16 = vmul.f32 %v3651_v14, %v3651_v14 }
 0x958   :  { %v3664_v17 = vsub.f32 %v3662_v15, %v3663_v16 }
 0x95a   :  { %v3665_v18 = vmax.f32 %v3664_v17, 0.0 }
 0x95c   :  { %v3666_v19 = vadd.f32 1e-05, %v3665_v18 }
 0x95e   :  { %5186 = vrsqrt.f32 %v3666_v19  ;;  %v3942_v19 = vld [vmem:[#allocation7 + $0x430] sm:$0x4] }
 0x95f   :  { %v3943_v20 = vunpack.c.l.bf16 %v3942_v19 }
 0x961   :  { %v3945_v21 = vrot.slane %v3943_v20, 1 }
 0x963   :  { %v3947_v22 = vadd.f32 %v3945_v21, %v3943_v20 }
 0x96b   :  { %v5187_v29 = vpop.eup %5186 }
 0x96c   :  { %v3680_v33 = vmul.f32 %v5187_v29, %v3673_v26 }
 0x96e   :  { %v3681_v36 = vmul.f32 %v3680_v33, %v3651_v14  ;;  %v3686_v39 = vpack.c.bf16 %v3680_v33, %v3680_v33 }
 0x970   :  { %v3683_v40 = vrot.slane %v3681_v36, 6  ;;  %v3687_v42 = vunpack.c.l.bf16 %v3686_v39 }
 0x972   :  { %v3685_v44 = vsub.f32 %v3679_v34, %v3683_v40  ;;  %v3688_v45 = vsub.f32 %v3680_v33, %v3687_v42 }
 0x974   :  { %v3689_v46 = vpack.c.bf16 %v3688_v45, %v3688_v45  ;;  %v3690_v47 = vpack.c.bf16 %v3685_v44, %v3685_v44 }
 0x976   :  { %v3691_v48 = vunpack.c.l.bf16 %v3690_v47  ;;  %v3695_v49 = vshll.u32 %v3689_v46, 16 }
 0x978   :  { %v3692_v50 = vsub.f32 %v3685_v44, %v3691_v48  ;;  %v3702_v32 = vsel %vm5382_vm6, %v3686_v39, %v3695_v49 }
 0x979   :  { %v3705_v52 = vsel %vm2105_vm1, %v3702_v32, %v3690_v47  ;;  %vm3969_vm1 = vcmask 261120  }
 0x97a   :  { %v3693_v51 = vpack.c.bf16 %v3692_v50, %v3692_v50 }
 0x97c   :  { %v3699_v8 = vshll.u32 %v3693_v51, 16 }
 0x97e   :  { %v3707_v53 = vsel %vm5389_vm8, %v3705_v52, %v3699_v8 }
 0x97f   :  { %4809 = vmatmul.mubr.msk.bf16.vlgmr.msra.gmra.mxu0 %vm3716_vm15, %v3707_v53 }
 0x980   :  { %4820 = vmatprep.mubr.msk.bf16.mxu0 %vm5283_vm0, %v5282_v31  ;;  %4813 = vmatpush3.bf16.msra.mxu0 %v5167_v54 }
 0x981   :  { %4814 = vmatprep.subr.bf16.mxu0 %v5282_v31 }
 0x984   :  { %4815 = vmatpush3.bf16.msra.mxu0 %v5171_v35 }
 0x985   :  { %4816 = vmatprep.subr.bf16.mxu0 %v5282_v31 }
 0x988   :  { %4817 = vmatpush3.bf16.msra.mxu0 %v5175_v43 }
 0x989   :  { %4818 = vmatprep.subr.bf16.mxu0 %v5282_v31 }
 0x98c   :  { %4819 = vmatpush3.bf16.msra.mxu0 %v5179_v60 }
 0xa3f   :  { %v3754_v61 = vpop.f32.mrf.mxu0 }
 0xa40   :  { %v3761_v62 = vrot.slane %v3754_v61, 1 }
 0xa41   :  { %v4810_v63 = vpop.f32.mrf.mxu0 }
 0xa42   :  { %v3763_v0 = vadd.f32 %v3761_v62, %v3754_v61 }
 0xa43   :  { %v3757_v1 = vpop.f32.mrf.mxu0 }
 0xa44   :  { %v3767_v2 = vrot.slane %v3763_v0, %v5399_v24  ;;  %v3772_v41 = vrot.slane %v3763_v0, %v5402_v27  ;;  %v5181_v24 = vld [vmem:[#allocation7 + $0x3e0] ss:$16 sps:$4 sm:$0xff]  }
 0xa45   :  { %v4811_v3 = vpop.f32.mrf.mxu0 }
 0xa46   :  { %v3768_v4 = vmul.f32 %v3767_v2, %v5476_v37 }
 0xa48   :  { %v3773_v5 = vadd.f32 %v3772_v41, %v3768_v4 }
 0xa4a   :  { %v3774_v6 = vmax.f32 %v3773_v5, 0.0 }
 0xa4c   :  { %v3775_v7 = vpack.c.bf16 %v3774_v6, %v3774_v6 }
 0xa4e   :  { %4340 = vmatmul.mubr.msk.bf16.vlgmr.msra.gmra.mxu1 %vm3502_vm13, %v3775_v7  ;;  %4821 = vmatmul.mubr.msk.bf16.vlgmr.msra.gmra.mxu0 %vm3502_vm13, %v3775_v7 }
 0xa4f   :  { %4828 = vmatprep.mubr.msk.bf16.mxu1 %vm5283_vm0, %v5282_v31  ;;  %4825 = vmatpush3.bf16.msra.mxu1 %v5180_v9  ;;  %vm4013_vm0 = vcmask 91136  }
 0xa50   :  { %4826 = vmatprep.subr.bf16.mxu1 %v5282_v31  ;;  %v3955_v31 = vsub.s32 4, %v5315_v30 }
 0xa52   :  { %v3956_v23 = vrot.slane %v3947_v22, %v3955_v31 }
 0xa53   :  { %4827 = vmatpush3.bf16.msra.mxu1 %v5181_v24 }
 0xb0e   :  { %v3893_v10 = vpop.f32.mrf.mxu1  ;;  %v3934_v37 = vpop.f32.mrf.mxu0 }
 0xb10   :  { %v3895_v11 = vpop.f32.mrf.mxu1  ;;  %v4822_v27 = vpop.f32.mrf.mxu0 }
 0xb11   :  { %v3940_v12 = vmax.f32 %v3893_v10, %v3895_v11 }
 0xb12   :  { %v3897_v14 = vpop.f32.mrf.mxu1  ;;  %v3937_v13 = vpop.f32.mrf.mxu0 }
 0xb13   :  { %v3941_v15 = vmax.f32 %v3940_v12, %v3934_v37 }
 0xb14   :  { %v3898_v16 = vpop.f32.mrf.mxu1  ;;  %v4823_v17 = vpop.f32.mrf.mxu0 }
 0xb15   :  { %v3948_v18 = vpack.c.bf16 %v3941_v15, %v3941_v15 }
 0xb17   :  { %4829 = vmatmul.mubr.msk.bf16.vlgmr.msra.gmra.mxu1 %vm3969_vm1, %v3948_v18 }
 0xbd7   :  { %v4007_v25 = vpop.f32.mrf.mxu1 }
 0xbd8   :  { %v4008_v26 = vadd.f32 %v4007_v25, %v3956_v23 }
 0xbd9   :  { %v4830_v28 = vpop.f32.mrf.mxu1 }
 0xbda   :  { %4014 = vst.msk [vmem:[#allocation8] sm:$0x3] %vm4013_vm0, %v4008_v26 }
 0xbdb   :  { %v4010_v29 = vpop.f32.mrf.mxu1 }
 0xbdc   :  { %5259 = shalt.err (!%p5256_p5)
}
 0xbdd   :  { %4024 = dma.vmem_to_hbm [thread:$0]  %s4022_s2, 32, %s5515_s3, [#allocation4]   ;;  %v4831_v30 = vpop.f32.mrf.mxu1 }
 0xbde   :  { %5272 = dma.done.wait [#allocation4], 32  }
 0xbdf   :  { %5273 = vsyncadd [#allocation4], 4294967264 }
 0xbe0   :  { %4028 = vsyncpa [#allocation3], 1 }
 0xbe1   :  { %4029 = vsyncpa [#allocation6], 1 }
 0xbe2   :  { %4030 = vsyncpa [#allocation4], 1 }

</bundles_post_ra>
